<compile_context>
chip_gen: v6e
topology: v6e:2x2x1
jax: 0.10.0
libtpu: 0.0.40
codegen_flags: <defaults>
</compile_context>

<pallas_src>
import functools

import jax
import jax.numpy as jnp
from jax import lax
from jax.experimental import pallas as pl
from jax.experimental.pallas import tpu as pltpu

COMPUTE_DTYPE = jnp.bfloat16     # MXU-native inputs (f32 accumulation in-kernel)
ACT_DTYPE = jnp.bfloat16         # activation dtype flowing between layers
VMEM_LIMIT_BYTES = 32 * 1024 * 1024   # explicit scoped VMEM (v5e default = 16 MiB)


# ----------------------------------------------------------------------------
# helpers
# ----------------------------------------------------------------------------
def _round_up(x, m):
    return ((x + m - 1) // m) * m


def _pick_divisor(n, candidates):
    for c in candidates:
        if n % c == 0:
            return c
    return candidates[-1]


def _choose_row_tile(m, candidates=(1024, 512, 256, 128, 64, 32, 16),
                     max_waste=0.125):
    """Largest row tile with small padding waste; rows are padded up to a
    multiple of the returned tile (multiples of 16 keep bf16 sublane pairs
    clean).  Never falls back to a giant single block."""
    m16 = _round_up(max(m, 1), 16)
    for c in candidates:
        if c <= m16 and (_round_up(m16, c) - m16) <= max_waste * m16:
            return c, _round_up(m16, c)
    return 16, m16


# ----------------------------------------------------------------------------
# Pallas kernels
# ----------------------------------------------------------------------------
def _gemm_kernel(relu, has_res, *refs):
    # refs: x(TM,TK) w(TK,TN) s(1,TN) t(1,TN) [r(TM,TN)] o(TM,TN) acc(TM,TN f32)
    if has_res:
        x_ref, w_ref, s_ref, t_ref, r_ref, o_ref, acc_ref = refs
    else:
        x_ref, w_ref, s_ref, t_ref, o_ref, acc_ref = refs
        r_ref = None

    @pl.when(pl.program_id(2) == 0)
    def _init():
        acc_ref[...] = jnp.zeros_like(acc_ref)

    acc_ref[...] += jnp.dot(x_ref[...], w_ref[...],
                            preferred_element_type=jnp.float32)

    @pl.when(pl.program_id(2) == pl.num_programs(2) - 1)
    def _finalize():
        y = acc_ref[...] * s_ref[...] + t_ref[...]
        if has_res:
            y = y + r_ref[...].astype(jnp.float32)
        if relu:
            y = jnp.maximum(y, 0.0)
        o_ref[...] = y.astype(o_ref.dtype)


def _maxtree_kernel(*refs):
    # refs[:-1] are KK window slices (TM, C); refs[-1] is the output (TM, C).
    o_ref = refs[-1]
    acc = refs[0][...]
    for r in refs[1:-1]:
        acc = jnp.maximum(acc, r[...])
    o_ref[...] = acc


def _global_max_kernel(x_ref, o_ref):
    # x:(B, S, C) -> o:(B, C); tiny, single invocation.
    o_ref[...] = jnp.max(x_ref[...].astype(jnp.float32), axis=1).astype(o_ref.dtype)


# ----------------------------------------------------------------------------
# Pallas wrappers
# ----------------------------------------------------------------------------
@functools.partial(jax.jit, static_argnames=("relu", "out_dtype"))
def _gemm_bn_act(x, w, scale, shift, residual=None, *, relu, out_dtype):
    """y = act((x @ w) * scale + shift [+ residual]).

    x:(M,K) (cast to bf16 inside), w:(Kp,Np) bf16 (pre-padded, K==Kp),
    scale/shift:(1,Np) f32, residual: None or (M,Nr) with Nr <= Np.
    Returns the PADDED (Mp,Np) result; callers slice.
    """
    M, K = x.shape
    Kp, Np = w.shape
    assert K == Kp, (K, Kp)

    TM, Mp = _choose_row_tile(M)
    # TN = Np (<=1024) streams the im2col panel exactly once; else split.
    TN = Np if Np <= 1024 else _pick_divisor(Np, (512, 256, 128))
    TK = _pick_divisor(Kp, (512, 256, 128))

    x = x.astype(COMPUTE_DTYPE)
    if Mp != M:
        x = jnp.pad(x, ((0, Mp - M), (0, 0)))

    has_res = residual is not None
    args = [x, w, scale, shift]
    in_specs = [
        pl.BlockSpec((TM, TK), lambda i, j, k: (i, k)),
        pl.BlockSpec((TK, TN), lambda i, j, k: (k, j)),
        pl.BlockSpec((1, TN), lambda i, j, k: (0, j)),
        pl.BlockSpec((1, TN), lambda i, j, k: (0, j)),
    ]
    if has_res:
        r = residual.astype(COMPUTE_DTYPE)
        rM, rN = r.shape
        if (Mp - rM) or (Np - rN):
            r = jnp.pad(r, ((0, Mp - rM), (0, Np - rN)))
        args.append(r)
        in_specs.append(pl.BlockSpec((TM, TN), lambda i, j, k: (i, j)))

    grid = (Mp // TM, Np // TN, Kp // TK)
    out = pl.pallas_call(
        functools.partial(_gemm_kernel, relu, has_res),
        out_shape=jax.ShapeDtypeStruct((Mp, Np), out_dtype),
        grid=grid,
        in_specs=in_specs,
        out_specs=pl.BlockSpec((TM, TN), lambda i, j, k: (i, j)),
        scratch_shapes=[pltpu.VMEM((TM, TN), jnp.float32)],
        compiler_params=pltpu.CompilerParams(
            dimension_semantics=("parallel", "parallel", "arbitrary"),
            vmem_limit_bytes=VMEM_LIMIT_BYTES),
    )(*args)
    return out


@functools.partial(jax.jit, static_argnames=("kh", "kw", "cout", "stride",
                                              "padding", "relu", "out_dtype"))
def conv2d_bn_act(x, wmat, scale, shift, residual=None, *, kh, kw, cout,
                  stride, padding, relu, out_dtype=ACT_DTYPE):
    """NHWC conv (im2col GEMM) + fused BN affine (+bias) [+ residual] [+ ReLU].

    wmat/scale/shift are pre-padded/bf16 from prepare_params."""
    B, H, W, Cin = x.shape
    Ho = (H + 2 * padding - kh) // stride + 1
    Wo = (W + 2 * padding - kw) // stride + 1
    K = kh * kw * Cin
    Kp = wmat.shape[0]

    x = x.astype(COMPUTE_DTYPE)
    if padding:
        x = jnp.pad(x, ((0, 0), (padding, padding), (padding, padding), (0, 0)))

    # im2col: single concatenate that already produces the K-padded panel.
    # TODO(synk): fold (di,dj) taps into the K grid axis to avoid the kh*kw
    # activation expansion entirely (per perf review).
    cols = []
    for di in range(kh):
        for dj in range(kw):
            cols.append(x[:, di:di + (Ho - 1) * stride + 1:stride,
                          dj:dj + (Wo - 1) * stride + 1:stride, :])
    if Kp > K:
        cols.append(jnp.zeros((B, Ho, Wo, Kp - K), COMPUTE_DTYPE))
    xcol = cols[0] if len(cols) == 1 else jnp.concatenate(cols, axis=-1)
    xcol = xcol.reshape(B * Ho * Wo, Kp)

    res = None
    if residual is not None:
        res = residual.reshape(B * Ho * Wo, residual.shape[-1])

    y = _gemm_bn_act(xcol, wmat, scale, shift, res, relu=relu,
                     out_dtype=out_dtype)
    return y[:B * Ho * Wo, :cout].reshape(B, Ho, Wo, cout)


@functools.partial(jax.jit, static_argnames=("kh", "kw", "sh", "sw", "ph", "pw"))
def maxpool2d(x, *, kh, kw, sh, sw, ph, pw):
    """MaxPool2d on NHWC. Window slices feed the kernel as separate inputs
    (no stacked (KK,M,C) HBM intermediate); 1x1-output pools use a single
    reduction kernel."""
    B, H, W, C = x.shape
    Ho = (H + 2 * ph - kh) // sh + 1
    Wo = (W + 2 * pw - kw) // sw + 1

    # Global pool (gpool): stride == kernel, no padding, 1x1 output.
    if kh == sh and kw == sw and ph == 0 and pw == 0 and Ho == 1 and Wo == 1:
        xr = x[:, :kh, :kw, :].reshape(B, kh * kw, C)
        out = pl.pallas_call(
            _global_max_kernel,
            out_shape=jax.ShapeDtypeStruct((B, C), x.dtype),
        )(xr)
        return out.reshape(B, 1, 1, C)

    neg = float(jnp.finfo(x.dtype).min)
    xp = jnp.pad(x, ((0, 0), (ph, ph), (pw, pw), (0, 0)), constant_values=neg)
    M = B * Ho * Wo
    TM, Mp = _choose_row_tile(M, candidates=(512, 256, 128, 64, 32, 16))
    wins = []
    for di in range(kh):
        for dj in range(kw):
            w = xp[:, di:di + (Ho - 1) * sh + 1:sh,
                   dj:dj + (Wo - 1) * sw + 1:sw, :].reshape(M, C)
            if Mp != M:
                w = jnp.pad(w, ((0, Mp - M), (0, 0)), constant_values=neg)
            wins.append(w)

    out = pl.pallas_call(
        _maxtree_kernel,
        out_shape=jax.ShapeDtypeStruct((Mp, C), x.dtype),
        grid=(Mp // TM,),
        in_specs=[pl.BlockSpec((TM, C), lambda i: (i, 0))] * len(wins),
        out_specs=pl.BlockSpec((TM, C), lambda i: (i, 0)),
        compiler_params=pltpu.CompilerParams(
            dimension_semantics=("parallel",),
            vmem_limit_bytes=VMEM_LIMIT_BYTES),
    )(*wins)
    return out[:M].reshape(B, Ho, Wo, C)


# ----------------------------------------------------------------------------
# Parameters: raw init + one-time preparation (BN fold, pad, bf16 cast)
# ----------------------------------------------------------------------------
def fold_bn(bn, conv_bias=None, eps=1e-5):
    scale = bn["gamma"] / jnp.sqrt(bn["var"] + eps)
    shift = bn["beta"] - bn["mean"] * scale
    if conv_bias is not None:
        shift = shift + scale * conv_bias
    return scale, shift


def _prep_gemm(w, scale, shift):
    kh, kw, cin, cout = w.shape
    K, N = kh * kw * cin, cout
    Kp, Np = _round_up(K, 128), _round_up(N, 128)
    wmat = jnp.pad(w.reshape(K, N),
                   ((0, Kp - K), (0, Np - N))).astype(COMPUTE_DTYPE)
    s = jnp.pad(scale.reshape(1, N).astype(jnp.float32),
                ((0, 0), (0, Np - N)), constant_values=1.0)
    t = jnp.pad(shift.reshape(1, N).astype(jnp.float32), ((0, 0), (0, Np - N)))
    return {"w": wmat, "s": s, "t": t, "kh": kh, "kw": kw, "cout": cout}


def _prep_linear(w, b):
    K, N = w.shape
    Kp, Np = _round_up(K, 128), _round_up(N, 128)
    wmat = jnp.pad(w, ((0, Kp - K), (0, Np - N))).astype(COMPUTE_DTYPE)
    s = jnp.pad(jnp.ones((1, N), jnp.float32), ((0, 0), (0, Np - N)),
                constant_values=1.0)
    t = jnp.pad(b.reshape(1, N).astype(jnp.float32), ((0, 0), (0, Np - N)))
    return {"w": wmat, "s": s, "t": t, "n": N}


def prepare_params(p):
    """One-time: fold BN, reshape to (K,N), pad to 128-multiples, cast bf16."""
    q = {"conv1": _prep_gemm(p["conv1"], *fold_bn(p["bn1"]))}
    for name in ("layer1", "layer2", "layer3", "layer4"):
        blocks = []
        for b in p[name]:
            pb = {"conv1": _prep_gemm(b["conv1"], *fold_bn(b["bn1"])),
                  "conv2": _prep_gemm(b["conv2"], *fold_bn(b["bn2"])),
                  "conv3": _prep_gemm(b["conv3"], *fold_bn(b["bn3"]))}
            if "down_conv" in b:
                pb["down"] = _prep_gemm(b["down_conv"], *fold_bn(b["down_bn"]))
            blocks.append(pb)
        q[name] = blocks
    q["transit"] = _prep_gemm(
        p["transit_conv"], *fold_bn(p["transit_bn"], conv_bias=p["transit_bias"]))
    q["fc"] = _prep_linear(p["fc_w"], p["fc_b"])
    return q


def _init_conv(key, kh, kw, cin, cout):
    std = (2.0 / (kh * kw * cin)) ** 0.5
    return std * jax.random.normal(key, (kh, kw, cin, cout), jnp.float32)


def _init_bn(key, c):
    k1, k2, k3, k4 = jax.random.split(key, 4)
    return {"gamma": 1.0 + 0.1 * jax.random.normal(k1, (c,), jnp.float32),
            "beta": 0.1 * jax.random.normal(k2, (c,), jnp.float32),
            "mean": 0.1 * jax.random.normal(k3, (c,), jnp.float32),
            "var": 1.0 + 0.1 * jax.random.uniform(k4, (c,), jnp.float32)}


def init_params(key, outnum=14):
    keys = iter(jax.random.split(key, 256))
    nk = lambda: next(keys)

    def make_block(cin, planes, downsample):
        b = {"conv1": _init_conv(nk(), 1, 1, cin, planes),
             "bn1": _init_bn(nk(), planes),
             "conv2": _init_conv(nk(), 3, 3, planes, planes),
             "bn2": _init_bn(nk(), planes),
             "conv3": _init_conv(nk(), 1, 1, planes, planes * 4),
             "bn3": _init_bn(nk(), planes * 4)}
        if downsample:
            b["down_conv"] = _init_conv(nk(), 1, 1, cin, planes * 4)
            b["down_bn"] = _init_bn(nk(), planes * 4)
        return b

    def make_stage(cin, planes, n):
        blocks = [make_block(cin, planes, True)]
        for _ in range(n - 1):
            blocks.append(make_block(planes * 4, planes, False))
        return blocks

    p = {"conv1": _init_conv(nk(), 7, 7, 3, 64), "bn1": _init_bn(nk(), 64)}
    p["layer1"] = make_stage(64, 64, 3)
    p["layer2"] = make_stage(256, 128, 4)
    p["layer3"] = make_stage(512, 256, 6)
    p["layer4"] = make_stage(1024, 512, 3)

    p["transit_conv"] = _init_conv(nk(), 3, 3, 2048, 1024)
    tb = 1.0 / (3 * 3 * 2048) ** 0.5
    p["transit_bias"] = jax.random.uniform(nk(), (1024,), jnp.float32, -tb, tb)
    p["transit_bn"] = _init_bn(nk(), 1024)

    fb = 1.0 / 1024 ** 0.5
    p["fc_w"] = jax.random.uniform(nk(), (1024, outnum), jnp.float32, -fb, fb)
    p["fc_b"] = jax.random.uniform(nk(), (outnum,), jnp.float32, -fb, fb)
    return p


# ----------------------------------------------------------------------------
# Model forward
# ----------------------------------------------------------------------------
def _run_conv(x, cp, *, stride, padding, relu, residual=None):
    return conv2d_bn_act(x, cp["w"], cp["s"], cp["t"], residual,
                         kh=cp["kh"], kw=cp["kw"], cout=cp["cout"],
                         stride=stride, padding=padding, relu=relu,
                         out_dtype=ACT_DTYPE)


def bottleneck_forward(x, pb, stride):
    if "down" in pb:
        identity = _run_conv(x, pb["down"], stride=stride, padding=0, relu=False)
    else:
        identity = x
    out = _run_conv(x, pb["conv1"], stride=1, padding=0, relu=True)
    out = _run_conv(out, pb["conv2"], stride=stride, padding=1, relu=True)
    # conv3 + BN + residual add + ReLU fused into one GEMM epilogue.
    return _run_conv(out, pb["conv3"], stride=1, padding=0, relu=True,
                     residual=identity)


def forward(prepared, x_nchw):
    x = jnp.transpose(x_nchw, (0, 2, 3, 1)).astype(ACT_DTYPE)   # -> NHWC bf16
    # stem
    x = _run_conv(x, prepared["conv1"], stride=2, padding=3, relu=True)
    x = maxpool2d(x, kh=3, kw=3, sh=2, sw=2, ph=1, pw=1)
    # residual stages
    for name, stride in (("layer1", 1), ("layer2", 2), ("layer3", 2),
                         ("layer4", 2)):
        blocks = prepared[name]
        x = bottleneck_forward(x, blocks[0], stride)
        for b in blocks[1:]:
            x = bottleneck_forward(x, b, 1)
    # transit: Conv2d(2048,1024,3,pad=1) + BN + ReLU + MaxPool2d(2, padding=1)
    x = _run_conv(x, prepared["transit"], stride=1, padding=1, relu=True)
    x = maxpool2d(x, kh=2, kw=2, sh=2, sw=2, ph=1, pw=1)
    # gpool: MaxPool2d(16). At the original ~1024px input the map is >=16x16;
    # at this small test resolution it degrades to a global max-pool to 1x1.
    k = min(16, x.shape[1], x.shape[2])
    x = maxpool2d(x, kh=k, kw=k, sh=k, sw=k, ph=0, pw=0)
    x = x.reshape(-1, 1024)                                   # x.view(-1,1024)
    fc = prepared["fc"]
    y = _gemm_bn_act(x, fc["w"], fc["s"], fc["t"], None, relu=False,
                     out_dtype=jnp.float32)
    return y[:x.shape[0], :fc["n"]]


# ----------------------------------------------------------------------------
# Precision-matched XLA reference (bf16 inputs, f32 accumulation) for checks
# ----------------------------------------------------------------------------
def _ref_conv(x, w, stride, padding):
    return lax.conv_general_dilated(
        x.astype(COMPUTE_DTYPE), w.astype(COMPUTE_DTYPE),
        window_strides=(stride, stride),
        padding=((padding, padding), (padding, padding)),
        dimension_numbers=("NHWC", "HWIO", "NHWC"),
        preferred_element_type=jnp.float32)


def _ref_cba(x, w, bn, stride, padding, relu, bias=None):
    s, t = fold_bn(bn, conv_bias=bias)
    y = _ref_conv(x, w, stride, padding) * s + t
    if relu:
        y = jnp.maximum(y, 0.0)
    return y.astype(ACT_DTYPE)


def _ref_maxpool(x, k, s, p):
    neg = jnp.asarray(jnp.finfo(x.dtype).min, x.dtype)
    return lax.reduce_window(x, neg, lax.max, (1, k, k, 1), (1, s, s, 1),
                             ((0, 0), (p, p), (p, p), (0, 0)))


def _ref_bottleneck(x, b, stride):
    if "down_conv" in b:
        idn = _ref_cba(x, b["down_conv"], b["down_bn"], stride, 0, relu=False)
    else:
        idn = x
    out = _ref_cba(x, b["conv1"], b["bn1"], 1, 0, relu=True)
    out = _ref_cba(out, b["conv2"], b["bn2"], stride, 1, relu=True)
    s, t = fold_bn(b["bn3"])
    y = _ref_conv(out, b["conv3"], 1, 0) * s + t + idn.astype(jnp.float32)
    return jnp.maximum(y, 0.0).astype(ACT_DTYPE)


def ref_forward(params, x_nchw):
    x = jnp.transpose(x_nchw, (0, 2, 3, 1)).astype(ACT_DTYPE)
    x = _ref_cba(x, params["conv1"], params["bn1"], 2, 3, relu=True)
    x = _ref_maxpool(x, 3, 2, 1)
    for name, stride in (("layer1", 1), ("layer2", 2), ("layer3", 2),
                         ("layer4", 2)):
        blocks = params[name]
        x = _ref_bottleneck(x, blocks[0], stride)
        for b in blocks[1:]:
            x = _ref_bottleneck(x, b, 1)
    x = _ref_cba(x, params["transit_conv"], params["transit_bn"], 1, 1,
                 relu=True, bias=params["transit_bias"])
    x = _ref_maxpool(x, 2, 2, 1)
    k = min(16, x.shape[1], x.shape[2])
    x = _ref_maxpool(x, k, k, 0)
    x = x.reshape(-1, 1024)
    y = jnp.dot(x.astype(COMPUTE_DTYPE), params["fc_w"].astype(COMPUTE_DTYPE),
                preferred_element_type=jnp.float32) + params["fc_b"]
    return y


# ----------------------------------------------------------------------------
if __name__ == "__main__":
    root = jax.random.PRNGKey(0)
    kp, kx = jax.random.split(root)
    raw_params = init_params(kp, outnum=14)
    prepared = prepare_params(raw_params)
    # Small NCHW input consistent with the module (32x total downsampling).
    x = jax.random.normal(kx, (2, 3, 64, 64), jnp.float32)

    y = forward(prepared, x)
    jax.block_until_ready(y)
    assert y.shape == (2, 14)
    assert bool(jnp.all(jnp.isfinite(y)))

    # Tight single-layer check (conv1 + BN + ReLU), precision-matched (bf16
    # inputs, f32 accumulate on both sides) -- catches layout/im2col bugs.
    x_nhwc = jnp.transpose(x, (0, 2, 3, 1)).astype(ACT_DTYPE)
    y1 = _run_conv(x_nhwc, prepared["conv1"], stride=2, padding=3, relu=True)
    y1_ref = _ref_cba(x_nhwc, raw_params["conv1"], raw_params["bn1"], 2, 3,
                      relu=True)
    d1 = jnp.abs(y1.astype(jnp.float32) - y1_ref.astype(jnp.float32))
    e1 = float(jnp.max(d1) / (jnp.max(jnp.abs(y1_ref.astype(jnp.float32))) + 1e-6))
    assert e1 < 2e-2, f"conv1 kernel mismatch: rel_err={e1}"

    # End-to-end check against a precision-matched XLA reference.
    y_ref = jax.jit(ref_forward)(raw_params, x)
    jax.block_until_ready(y_ref)
    e = float(jnp.max(jnp.abs(y - y_ref)) / (jnp.max(jnp.abs(y_ref)) + 1e-6))
    assert e < 0.15, f"end-to-end mismatch: rel_err={e}"

    print("KERNEL_OK")
</pallas_src>

<mosaic_0001>
module attributes {stable_mosaic.version = 11 : i64} {
  func.func @_gemm_kernel(%arg0: i32, %arg1: i32, %arg2: i32, %arg3: memref<1024x256xbf16, #tpu.memory_space<vmem>>, %arg4: memref<256x128xbf16, #tpu.memory_space<vmem>>, %arg5: memref<1x128xf32, #tpu.memory_space<vmem>>, %arg6: memref<1x128xf32, #tpu.memory_space<vmem>>, %arg7: memref<1024x128xbf16, #tpu.memory_space<vmem>>, %arg8: memref<1024x128xf32, #tpu.memory_space<vmem>>) attributes {dimension_semantics = [#tpu.dimension_semantics<parallel>, #tpu.dimension_semantics<parallel>, #tpu.dimension_semantics<arbitrary>], iteration_bounds = array<i64: 2, 1, 1>, scalar_prefetch = 0 : i64, scratch_operands = 1 : i64, tpu.core_type = #tpu.core_type<tc>, window_params = [{transform_indices = @transform_0, window_bounds = array<i64: 1024, 256>}, {transform_indices = @transform_1, window_bounds = array<i64: 256, 128>}, {transform_indices = @transform_2, window_bounds = array<i64: 1, 128>}, {transform_indices = @transform_3, window_bounds = array<i64: 1, 128>}, {transform_indices = @transform_4, window_bounds = array<i64: 1024, 128>}]} {
    %c0_i32 = arith.constant 0 : i32
    %0 = arith.cmpi eq, %arg2, %c0_i32 : i32
    %1 = arith.extui %0 : i1 to i32
    %c0_i32_0 = arith.constant 0 : i32
    %2 = arith.cmpi ne, %1, %c0_i32_0 : i32
    scf.if %2 {
      %cst_10 = arith.constant 0.000000e+00 : f32
      %12 = vector.broadcast %cst_10 : f32 to vector<1024x128xf32>
      %c0_11 = arith.constant 0 : index
      %c0_12 = arith.constant 0 : index
      %13 = vector.load %arg8[%c0_11, %c0_12] : memref<1024x128xf32, #tpu.memory_space<vmem>>, vector<1024x128xf32>
      tpu.vector_store %arg8[%c0_11, %c0_12], %12 {strides = array<i32>} : memref<1024x128xf32, #tpu.memory_space<vmem>>, vector<1024x128xf32>,
    } else {
    }
    %c0 = arith.constant 0 : index
    %c0_1 = arith.constant 0 : index
    %3 = vector.load %arg8[%c0, %c0_1] : memref<1024x128xf32, #tpu.memory_space<vmem>>, vector<1024x128xf32>
    %c0_2 = arith.constant 0 : index
    %c0_3 = arith.constant 0 : index
    %4 = vector.load %arg3[%c0_2, %c0_3] : memref<1024x256xbf16, #tpu.memory_space<vmem>>, vector<1024x256xbf16>
    %c0_4 = arith.constant 0 : index
    %c0_5 = arith.constant 0 : index
    %5 = vector.load %arg4[%c0_4, %c0_5] : memref<256x128xbf16, #tpu.memory_space<vmem>>, vector<256x128xbf16>
    %cst = arith.constant dense<0.000000e+00> : vector<1024x128xf32>
    %6 = tpu.matmul %4, %5, %cst {dimension_numbers = #tpu.dot_dimension_numbers<[1], [0], [0], [1], [0, 0, 1, 1], [], []>} : vector<1024x256xbf16>, vector<256x128xbf16>, vector<1024x128xf32> -> vector<1024x128xf32>
    %7 = arith.addf %3, %6 : vector<1024x128xf32>
    %c0_6 = arith.constant 0 : index
    %c0_7 = arith.constant 0 : index
    %8 = vector.load %arg8[%c0_6, %c0_7] : memref<1024x128xf32, #tpu.memory_space<vmem>>, vector<1024x128xf32>
    tpu.vector_store %arg8[%c0_6, %c0_7], %7 {strides = array<i32>} : memref<1024x128xf32, #tpu.memory_space<vmem>>, vector<1024x128xf32>,
    %c0_i32_8 = arith.constant 0 : i32
    %9 = arith.cmpi eq, %arg2, %c0_i32_8 : i32
    %10 = arith.extui %9 : i1 to i32
    %c0_i32_9 = arith.constant 0 : i32
    %11 = arith.cmpi ne, %10, %c0_i32_9 : i32
    scf.if %11 {
      %c0_10 = arith.constant 0 : index
      %c0_11 = arith.constant 0 : index
      %12 = vector.load %arg8[%c0_10, %c0_11] : memref<1024x128xf32, #tpu.memory_space<vmem>>, vector<1024x128xf32>
      %c0_12 = arith.constant 0 : index
      %c0_13 = arith.constant 0 : index
      %13 = vector.load %arg5[%c0_12, %c0_13] : memref<1x128xf32, #tpu.memory_space<vmem>>, vector<1x128xf32>
      %14 = vector.broadcast %13 : vector<1x128xf32> to vector<1024x128xf32>
      %15 = arith.mulf %12, %14 : vector<1024x128xf32>
      %c0_14 = arith.constant 0 : index
      %c0_15 = arith.constant 0 : index
      %16 = vector.load %arg6[%c0_14, %c0_15] : memref<1x128xf32, #tpu.memory_space<vmem>>, vector<1x128xf32>
      %17 = vector.broadcast %16 : vector<1x128xf32> to vector<1024x128xf32>
      %18 = arith.addf %15, %17 : vector<1024x128xf32>
      %cst_16 = arith.constant 0.000000e+00 : f32
      %19 = vector.broadcast %cst_16 : f32 to vector<1024x128xf32>
      %20 = arith.maximumf %18, %19 : vector<1024x128xf32>
      %21 = arith.truncf %20 : vector<1024x128xf32> to vector<1024x128xbf16>
      %c0_17 = arith.constant 0 : index
      %c0_18 = arith.constant 0 : index
      %22 = vector.load %arg7[%c0_17, %c0_18] : memref<1024x128xbf16, #tpu.memory_space<vmem>>, vector<1024x128xbf16>
      tpu.vector_store %arg7[%c0_17, %c0_18], %21 {strides = array<i32>} : memref<1024x128xbf16, #tpu.memory_space<vmem>>, vector<1024x128xbf16>,
    } else {
    }
    return
  }
  func.func @transform_0(%arg0: i32, %arg1: i32, %arg2: i32) -> (i32, i32) {
    %c0_i32 = arith.constant 0 : i32
    return %arg0, %arg2 : i32, i32
  }
  func.func @transform_1(%arg0: i32, %arg1: i32, %arg2: i32) -> (i32, i32) {
    %c0_i32 = arith.constant 0 : i32
    return %arg2, %arg1 : i32, i32
  }
  func.func @transform_2(%arg0: i32, %arg1: i32, %arg2: i32) -> (i32, i32) {
    %c0_i32 = arith.constant 0 : i32
    %c0_i32_0 = arith.constant 0 : i32
    return %c0_i32, %arg1 : i32, i32
  }
  func.func @transform_3(%arg0: i32, %arg1: i32, %arg2: i32) -> (i32, i32) {
    %c0_i32 = arith.constant 0 : i32
    %c0_i32_0 = arith.constant 0 : i32
    return %c0_i32, %arg1 : i32, i32
  }
  func.func @transform_4(%arg0: i32, %arg1: i32, %arg2: i32) -> (i32, i32) {
    %c0_i32 = arith.constant 0 : i32
    return %arg0, %arg1 : i32, i32
  }
}

</mosaic_0001>

<bundles_post_ra>
// kernel: _gemm_bn_act.1
= control target key start
LH: loop header
LB: loop body
LE: loop exit
PB: predicated region body
PF: predicated region fallthrough
CT: control target
= control target key end

     0   :  { %s5561_s0 = inlined_call_operand.hbm [shape: bf16[2048,256], index: 0, kind: input, shape index: {}]   ;;  %s5562_s1 = inlined_call_operand.hbm [shape: bf16[256,128], index: 1, kind: input, shape index: {}]   ;;  %s5563_s2 = inlined_call_operand.vmem [shape: f32[1,128], index: 2, kind: input, shape index: {}]   ;;  %s5564_s3 = inlined_call_operand.vmem [shape: f32[1,128], index: 3, kind: input, shape index: {}]   ;;  %s5565_s4 = inlined_call_operand.hbm [shape: bf16[2048,128], index: 4, kind: output, shape index: {}]  }
   0x1   :  { %5567 = sst [smem:[#allocation12_spill]] %s5562_s1 }
   0x2   :  { %9 = vsyncpa [#allocation4], 0 }
   0x3   :  { %11 = vsyncpa [#allocation4 + $0x1], 0 }
   0x4   :  { %12 = vsyncpa [#allocation7], 0 }
   0x5   :  { %13 = vsyncpa [#allocation5], 0 }
   0x6   :  { %15 = vsyncpa [#allocation5 + $0x1], 0  ;;  %s4874_s15 = smov 0   ;;  %s4876_s16 = smov 0  }
   0x7   :  { %s4878_s17 = smov 0   ;;  %s4880_s18 = smov 0  }
   0x8   :  { %s4882_s19 = smov 0   ;;  %s4884_s20 = smov 0  }
   0x9 LB: > { %s3569_s21 = sadd.s32 4294967295, %s4837_s20   ;;  %s3570_s22 = sadd.s32 4294967294, %s4837_s20   ;;  %s4837_s20 = sphi %s4884_s20, %s21_s20   ;;  %s4833_s19 = sphi %s4882_s19, %s5585_s19   ;;  %s4829_s18 = sphi %s4880_s18, %s5584_s18   ;;  %s4825_s17 = sphi %s4878_s17, %s5583_s17   ;;  %s4821_s16 = sphi %s4876_s16, %s5582_s16   ;;  %s4817_s15 = sphi %s4874_s15, %s5581_s15  }
   0xa   : > { %p62_p0 = scmp.ne.s32.totalorder %s4821_s16, %s4817_s15  ;;  %p4908_p1 = scmp.eq.s32.totalorder %s3569_s21, 0 }
   0xb   : > { %p4912_p2 = scmp.eq.s32.totalorder %s3569_s21, 1  ;;  %p174_p3 = scmp.eq.s32.totalorder %s3570_s22, 1 }
   0xc   : > { %p4918_p4 = por %p4908_p1, %p62_p0  ;;  %p3571_p5 = scmp.ge.s32.totalorder %s4837_s20, 1 }
   0xd   : > { %p4923_p6 = por %p174_p3, %p62_p0  ;;  %p181_p7 = scmp.lt.s32.totalorder %s4837_s20, 3 }
   0xe   : > { %s5570_s25 = scalar_select %p4918_p4, 1, 0 }
   0xf   : > { %s5571_s26 = scalar_select %p4923_p6, 1, 0 }
  0x10   : > { %p4928_p8 = pnand %p3571_p5, %p181_p7  ;;  %s4839_s28 = smov [#allocation6]  }
  0x11   : > { %s197_s29 = sshll.u32 %s4839_s28, 4  ;;  %s40_s5 = sadd.s32 1, %s4833_s19  ;;  %s198_s29 = int_to_ptr.vmem [resolvable:$true] %s197_s29 }
  0x12   : > { %p4417_p9 = pneg %p4928_p8  ;;  %s4710_s6 = scalar_lea.vmem %s198_s29, 2048 }
  0x13   : > { %p4711_p13 = scmp.ne.s32.totalorder %s198_s29, %s4710_s6  ;;  %p4718_p5 = scmp.lt.s32.totalorder %s198_s29, %s198_s29 }
  0x14   : > { %p4937_p11 = pnand %p4417_p9, %p4908_p1  ;;  %p4719_p7 = scmp.lt.s32.totalorder %s4710_s6, %s4710_s6 }
  0x16   : > { %p4701_p12 = pneg %p4937_p11  ;;  %p4720_p6 = por %p4719_p7, %p4718_p5 }
  0x18   : > { %p4713_p0 = pnand %p4711_p13, %p4701_p12 }
  0x1a   : > { %p4714_p3 = pneg %p4713_p0 }
  0x1c   : > { %p4721_p4 = pnand %p4720_p6, %p4714_p3 }
  0x1e   : > { %4724 = shalt.err (!%p4721_p4)
}
  0x1f   : > { %s4840_s7 = smov 64   ;;  %s4841_s8 = smov 4  }
  0x20   : > { %s5574_s1 = sld [smem:[#allocation12_spill]]  ;;  %p42_p6 = scmp.ge.s32.totalorder %s40_s5, 2 }
  0x21   : > { %s49_s11 = sadd.s32 1, %s4825_s17  ;;  %p56_p4 = scmp.ne.s32.totalorder %s4825_s17, %s4821_s16 }
  0x22   : > { %p57_p9 = scmp.eq.s32.totalorder %s4837_s20, 0  ;;  %s5587_s5 = smov (%p42_p6, %s40_s5), 0 }
  0x23   : > { %p4961_p13 = por %p4912_p2, %p56_p4  ;;  %s44_s14 = ssub.s32 %s4833_s19, %s5587_s5 }
  0x24   : > { %p4955_p12 = por %p57_p9, %p56_p4  ;;  %p4430_p0 = scmp.lt.s32.totalorder %s4837_s20, 2 }
  0x25   : > { %s223_s21 = sand.u32 1, %s4825_s17  }
  0x26   : > { %4420 = dma.hbm_to_vmem [thread:$0]  (!%p4937_p11), %s5574_s1, 2048, %s198_s29, [#allocation7], %s4840_s7, %s4840_s7, %s4841_s8  }
  0x27   : > { %p47_p11 = scmp.eq.s32.totalorder %s44_s14, 0  ;;  %s3576_s22 = sshll.u32 %s223_s21, 10 }
  0x28   : > { %s3864_s29 = sshll.u32 %s4833_s19, 14  ;;  %s227_s8 = scalar_lea.vmem [#allocation3], %s3576_s22 }
  0x29   : > { %s4970_s28 = scalar_select %p47_p11, %s4825_s17, %s49_s11  }
  0x2a   : > { %s236_s7 = scalar_lea.hbm %s5561_s0, %s3864_s29  ;;  %s237_s9 = sshll.u32 %s227_s8, 4  ;;  %s238_s9 = int_to_ptr.vmem [resolvable:$true] %s237_s9 }
  0x2b   : > { %p4978_p2 = pnand %p4430_p0, %p4955_p12  ;;  %s224_s10 = scalar_lea.sflag [#allocation4], %s223_s21 }
  0x2c   : > { %s4738_s14 = scalar_lea.vmem %s238_s9, 16384  ;;  %s4842_s11 = smov [#allocation3]  }
  0x2d   : > { %p4727_p3 = pneg %p4978_p2  ;;  %p4739_p5 = scmp.ne.s32.totalorder %s238_s9, %s4738_s14 }
  0x2e   : > { %s4743_s1 = sshll.u32 %s4842_s11, 4  ;;  %s4744_s1 = int_to_ptr.vmem [resolvable:$false] %s4743_s1 }
  0x2f   : > { %p4741_p7 = pnand %p4739_p5, %p4727_p3  ;;  %s4745_s29 = scalar_lea.vmem %s4744_s1, 32768 }
  0x30   : > { %p4746_p4 = scmp.lt.s32.totalorder %s238_s9, %s4744_s1  ;;  %p4747_p9 = scmp.lt.s32.totalorder %s4745_s29, %s4738_s14 }
  0x31   : > { %p4742_p6 = pneg %p4741_p7 }
  0x32   : > { %p4748_p11 = por %p4747_p9, %p4746_p4 }
  0x34   : > { %p4749_p10 = pnand %p4748_p11, %p4742_p6 }
  0x36   : > { %4752 = shalt.err (!%p4749_p10)
}
  0x37   : > { %s4843_s12 = smov 128   ;;  %s4844_s22 = smov 8  }
  0x38   : > { %4424 = dma.hbm_to_vmem [thread:$0]  (!%p4978_p2), %s236_s7, 16384, %s238_s9, %s224_s10, %s4843_s12, %s4843_s12, %s4844_s22  }
  0x39   : > { %249 = sbr.rel (%p4928_p8) target bundleno = 597 (0x255), region = 36  ;;  %s4989_s21 = sand.u32 (!%p4928_p8), 1, %s4821_s16  }
  0x3a   : > { %s3581_s30 = sshll.u32 (!%p4928_p8), %s4989_s21, 10  ;;  %s252_s1 = scalar_lea.sflag (!%p4928_p8), [#allocation4], %s4989_s21 }
  0x3b   : > { %s4993_s6 = scalar_lea.vmem (!%p4928_p8), [#allocation3], %s3581_s30  ;;  %p5578_p12 = scmp.ne.s32.totalorder (!%p4928_p8), %s5570_s25, 0 }
  0x3e   : > { %4804 = dma.done.wait (%p5578_p12), %s252_s1, 16384  }
  0x3f   : > { %4806 = vsyncadd (%p5578_p12), %s252_s1, 4294950912 }
  0x40   : > { %4808 = dma.done.wait (%p4908_p1), [#allocation7], 2048  }
  0x41   : > { %4810 = vsyncadd (%p4908_p1), [#allocation7], 4294965248  ;;  %v4845_v0 = vmov 0   ;;  %v4489_v1 = vld [vmem:[#allocation6 + $0x38] sm:$0xff]   ;;  %v4490_v2 = vld [vmem:[#allocation6 + $0x30] sm:$0xff]   ;;  %s3583_s8 = sshll.u32 %s4989_s21, 9 }
  0x42   : > { %1457 = vmatprep.subr.bf16.mxu0 %v4845_v0  ;;  %4377 = vmatprep.subr.bf16.mxu1 %v4845_v0  ;;  %v4491_v3 = vld [vmem:[#allocation6 + $0x28] sm:$0xff]   ;;  %v4492_v4 = vld [vmem:[#allocation6 + $0x20] sm:$0xff]   ;;  %v4493_v5 = vld [vmem:[#allocation6 + $0x18] sm:$0xff]   ;;  %s5166_s9 = scalar_lea.vmem [#allocation8], %s3583_s8  ;;  %s3993_s29 = sshll.u32 %s4829_s18, 13 }
  0x43   : > { %1458 = vmatpush1.bf16.msra.mxu0 %v4489_v1  ;;  %4393 = vmatpush1.bf16.msra.mxu1 %v4489_v1  ;;  %v4507_v6 = vld [vmem:[%s4993_s6 + $0x4] ss:$8 sps:$4 sm:$0xff]   ;;  %v4494_v7 = vld [vmem:[#allocation6 + $0x10] sm:$0xff]   ;;  %v4497_v11 = vld [vmem:[#allocation6 + $0x78] sm:$0xff]   ;;  %s3442_s12 = sshll.u32 %s5166_s9, 4  ;;  %s5509_s1 = scalar_lea.hbm %s5565_s4, %s3993_s29  ;;  %s5511_s12 = int_to_ptr.vmem [resolvable:$true] %s3442_s12 }
  0x44   : > { %1459 = vmatprep.subr.bf16.mxu0 %v4845_v0  ;;  %4378 = vmatprep.subr.bf16.mxu1 %v4845_v0  ;;  %v4510_v8 = vld [vmem:[%s4993_s6 + $0x204] ss:$8 sps:$4 sm:$0xff]   ;;  %v4498_v12 = vld [vmem:[#allocation6 + $0x70] sm:$0xff]   ;;  %v4501_v15 = vld [vmem:[#allocation6 + $0x58] sm:$0xff]   ;;  %s3428_s18 = scalar_lea.sflag [#allocation5], %s4989_s21  ;;  %s4846_s23 = smov [#allocation8]  }
  0x45   : > { %1489 = vmatprep.mubr.bf16.mxu0 %v4507_v6  ;;  %1745 = vmatprep.mubr.bf16.mxu1 %v4510_v8  ;;  %v4495_v9 = vld [vmem:[#allocation6 + $0x8] sm:$0xff]   ;;  %v4496_v10 = vld [vmem:[#allocation6] sm:$0xff]   ;;  %v4502_v16 = vld [vmem:[#allocation6 + $0x50] sm:$0xff]   ;;  %s4757_s25 = sshll.u32 %s4846_s23, 4  ;;  %s4758_s25 = int_to_ptr.vmem [resolvable:$false] %s4757_s25 }
  0x46   : > { %v4499_v13 = vld [vmem:[#allocation6 + $0x68] sm:$0xff]   ;;  %v4500_v14 = vld [vmem:[#allocation6 + $0x60] sm:$0xff]   ;;  %v4511_v21 = vld [vmem:[%s4993_s6 + $0x14] ss:$8 sps:$4 sm:$0xff]   ;;  %s4759_s27 = scalar_lea.vmem %s4758_s25, 16384  ;;  %p4760_p0 = scmp.lt.s32.totalorder %s5511_s12, %s4758_s25 }
  0x47   : > { %1460 = vmatpush1.bf16.msra.mxu0 %v4490_v2  ;;  %4394 = vmatpush1.bf16.msra.mxu1 %v4490_v2  ;;  %v4503_v17 = vld [vmem:[#allocation6 + $0x48] sm:$0xff]   ;;  %v4504_v18 = vld [vmem:[#allocation6 + $0x40] sm:$0xff]   ;;  %v4513_v22 = vld [vmem:[%s4993_s6 + $0x214] ss:$8 sps:$4 sm:$0xff]  }
  0x48   : > { %1461 = vmatprep.subr.bf16.mxu0 %v4845_v0  ;;  %4379 = vmatprep.subr.bf16.mxu1 %v4845_v0  ;;  %v4505_v19 = vld [vmem:[%s4993_s6] ss:$8 sps:$4 sm:$0xff]   ;;  %v4515_v23 = vld [vmem:[%s4993_s6 + $0x10] ss:$8 sps:$4 sm:$0xff]   ;;  %v4517_v25 = vld [vmem:[%s4993_s6 + $0x24] ss:$8 sps:$4 sm:$0xff]  }
  0x49   : > { %v4508_v20 = vld [vmem:[%s4993_s6 + $0x200] ss:$8 sps:$4 sm:$0xff]   ;;  %v4516_v24 = vld [vmem:[%s4993_s6 + $0x210] ss:$8 sps:$4 sm:$0xff]   ;;  %v4519_v26 = vld [vmem:[%s4993_s6 + $0x224] ss:$8 sps:$4 sm:$0xff]  }
  0x4a   : > { %v4521_v27 = vld [vmem:[%s4993_s6 + $0x20] ss:$8 sps:$4 sm:$0xff]   ;;  %v4523_v29 = vld [vmem:[%s4993_s6 + $0x34] ss:$8 sps:$4 sm:$0xff]   ;;  %v4527_v31 = vld [vmem:[%s4993_s6 + $0x30] ss:$8 sps:$4 sm:$0xff]  }
  0x4b   : > { %1462 = vmatpush1.bf16.msra.mxu0 %v4491_v3  ;;  %4395 = vmatpush1.bf16.msra.mxu1 %v4491_v3  ;;  %v4522_v28 = vld [vmem:[%s4993_s6 + $0x220] ss:$8 sps:$4 sm:$0xff]   ;;  %v4525_v30 = vld [vmem:[%s4993_s6 + $0x234] ss:$8 sps:$4 sm:$0xff]   ;;  %v4528_v32 = vld [vmem:[%s4993_s6 + $0x230] ss:$8 sps:$4 sm:$0xff]  }
  0x4c   : > { %1463 = vmatprep.subr.bf16.mxu0 %v4845_v0  ;;  %4380 = vmatprep.subr.bf16.mxu1 %v4845_v0  ;;  %v4529_v33 = vld [vmem:[%s4993_s6 + $0x44] ss:$8 sps:$4 sm:$0xff]   ;;  %v4533_v35 = vld [vmem:[%s4993_s6 + $0x40] ss:$8 sps:$4 sm:$0xff]   ;;  %v4535_v37 = vld [vmem:[%s4993_s6 + $0x54] ss:$8 sps:$4 sm:$0xff]  }
  0x4d   : > { %v4531_v34 = vld [vmem:[%s4993_s6 + $0x244] ss:$8 sps:$4 sm:$0xff]   ;;  %v4534_v36 = vld [vmem:[%s4993_s6 + $0x240] ss:$8 sps:$4 sm:$0xff]   ;;  %v4537_v38 = vld [vmem:[%s4993_s6 + $0x254] ss:$8 sps:$4 sm:$0xff]  }
  0x4e   : > { %v4539_v39 = vld [vmem:[%s4993_s6 + $0x50] ss:$8 sps:$4 sm:$0xff]   ;;  %v4541_v41 = vld [vmem:[%s4993_s6 + $0x64] ss:$8 sps:$4 sm:$0xff]   ;;  %v4545_v43 = vld [vmem:[%s4993_s6 + $0x60] ss:$8 sps:$4 sm:$0xff]  }
  0x4f   : > { %1464 = vmatpush1.bf16.msra.mxu0 %v4492_v4  ;;  %4396 = vmatpush1.bf16.msra.mxu1 %v4492_v4  ;;  %v4540_v40 = vld [vmem:[%s4993_s6 + $0x250] ss:$8 sps:$4 sm:$0xff]   ;;  %v4543_v42 = vld [vmem:[%s4993_s6 + $0x264] ss:$8 sps:$4 sm:$0xff]   ;;  %v4546_v44 = vld [vmem:[%s4993_s6 + $0x260] ss:$8 sps:$4 sm:$0xff]  }
  0x50   : > { %1465 = vmatprep.subr.bf16.mxu0 %v4845_v0  ;;  %4381 = vmatprep.subr.bf16.mxu1 %v4845_v0  ;;  %v4547_v45 = vld [vmem:[%s4993_s6 + $0x74] ss:$8 sps:$4 sm:$0xff]   ;;  %v4551_v47 = vld [vmem:[%s4993_s6 + $0x70] ss:$8 sps:$4 sm:$0xff]   ;;  %v4553_v49 = vld [vmem:[%s4993_s6 + $0x84] ss:$8 sps:$4 sm:$0xff]  }
  0x51   : > { %v4549_v46 = vld [vmem:[%s4993_s6 + $0x274] ss:$8 sps:$4 sm:$0xff]   ;;  %v4552_v48 = vld [vmem:[%s4993_s6 + $0x270] ss:$8 sps:$4 sm:$0xff]   ;;  %v4555_v50 = vld [vmem:[%s4993_s6 + $0x284] ss:$8 sps:$4 sm:$0xff]  }
  0x52   : > { %v4557_v51 = vld [vmem:[%s4993_s6 + $0x80] ss:$8 sps:$4 sm:$0xff]   ;;  %v4559_v53 = vld [vmem:[%s4993_s6 + $0x94] ss:$8 sps:$4 sm:$0xff]   ;;  %v4563_v55 = vld [vmem:[%s4993_s6 + $0x90] ss:$8 sps:$4 sm:$0xff]  }
  0x53   : > { %1466 = vmatpush1.bf16.msra.mxu0 %v4493_v5  ;;  %4397 = vmatpush1.bf16.msra.mxu1 %v4493_v5  ;;  %v4558_v52 = vld [vmem:[%s4993_s6 + $0x280] ss:$8 sps:$4 sm:$0xff]   ;;  %v4561_v54 = vld [vmem:[%s4993_s6 + $0x294] ss:$8 sps:$4 sm:$0xff]   ;;  %v4564_v56 = vld [vmem:[%s4993_s6 + $0x290] ss:$8 sps:$4 sm:$0xff]  }
  0x54   : > { %1467 = vmatprep.subr.bf16.mxu0 %v4845_v0  ;;  %4382 = vmatprep.subr.bf16.mxu1 %v4845_v0  ;;  %v4565_v57 = vld [vmem:[%s4993_s6 + $0xa4] ss:$8 sps:$4 sm:$0xff]   ;;  %v4569_v59 = vld [vmem:[%s4993_s6 + $0xa0] ss:$8 sps:$4 sm:$0xff]   ;;  %v4571_v61 = vld [vmem:[%s4993_s6 + $0xb4] ss:$8 sps:$4 sm:$0xff]  }
  0x55   : > { %v4567_v58 = vld [vmem:[%s4993_s6 + $0x2a4] ss:$8 sps:$4 sm:$0xff]   ;;  %v4570_v60 = vld [vmem:[%s4993_s6 + $0x2a0] ss:$8 sps:$4 sm:$0xff]   ;;  %v4573_v62 = vld [vmem:[%s4993_s6 + $0x2b4] ss:$8 sps:$4 sm:$0xff]  }
  0x56   : > { %v4575_v63 = vld [vmem:[%s4993_s6 + $0xb0] ss:$8 sps:$4 sm:$0xff]   ;;  %v4577_v1 = vld [vmem:[%s4993_s6 + $0xc4] ss:$8 sps:$4 sm:$0xff]   ;;  %v4581_v3 = vld [vmem:[%s4993_s6 + $0xc0] ss:$8 sps:$4 sm:$0xff]  }
  0x57   : > { %1468 = vmatpush1.bf16.msra.mxu0 %v4494_v7  ;;  %4398 = vmatpush1.bf16.msra.mxu1 %v4494_v7  ;;  %v4579_v2 = vld [vmem:[%s4993_s6 + $0x2c4] ss:$8 sps:$4 sm:$0xff]   ;;  %v4582_v4 = vld [vmem:[%s4993_s6 + $0x2c0] ss:$8 sps:$4 sm:$0xff]   ;;  %v4583_v5 = vld [vmem:[%s4993_s6 + $0xd4] ss:$8 sps:$4 sm:$0xff]  }
  0x58   : > { %1469 = vmatprep.subr.bf16.mxu0 %v4845_v0  ;;  %4383 = vmatprep.subr.bf16.mxu1 %v4845_v0  ;;  %v4585_v6 = vld [vmem:[%s4993_s6 + $0x2d4] ss:$8 sps:$4 sm:$0xff]   ;;  %v4587_v7 = vld [vmem:[%s4993_s6 + $0xd0] ss:$8 sps:$4 sm:$0xff]  }
  0x59   : > { %v4588_v8 = vld [vmem:[%s4993_s6 + $0x2d0] ss:$8 sps:$4 sm:$0xff]  }
  0x5b   : > { %1470 = vmatpush1.bf16.msra.mxu0 %v4495_v9  ;;  %4399 = vmatpush1.bf16.msra.mxu1 %v4495_v9  ;;  %v4589_v9 = vld [vmem:[%s4993_s6 + $0xe4] ss:$8 sps:$4 sm:$0xff]  }
  0x5c   : > { %1471 = vmatprep.subr.bf16.mxu0 %v4845_v0  ;;  %4384 = vmatprep.subr.bf16.mxu1 %v4845_v0 }
  0x5f   : > { %1472 = vmatpush1.bf16.msra.mxu0 %v4496_v10  ;;  %4400 = vmatpush1.bf16.msra.mxu1 %v4496_v10  ;;  %v4591_v10 = vld [vmem:[%s4993_s6 + $0x2e4] ss:$8 sps:$4 sm:$0xff]  }
  0x60   : > { %1473 = vmatprep.subr.bf16.mxu0 %v4845_v0  ;;  %4385 = vmatprep.subr.bf16.mxu1 %v4845_v0 }
  0x63   : > { %1474 = vmatpush2.bf16.msra.mxu0 %v4497_v11  ;;  %4401 = vmatpush2.bf16.msra.mxu1 %v4497_v11  ;;  %v4593_v11 = vld [vmem:[%s4993_s6 + $0xe0] ss:$8 sps:$4 sm:$0xff]  }
  0x64   : > { %1475 = vmatprep.subr.bf16.mxu0 %v4845_v0  ;;  %4386 = vmatprep.subr.bf16.mxu1 %v4845_v0 }
  0x67   : > { %1476 = vmatpush2.bf16.msra.mxu0 %v4498_v12  ;;  %4402 = vmatpush2.bf16.msra.mxu1 %v4498_v12  ;;  %v4594_v12 = vld [vmem:[%s4993_s6 + $0x2e0] ss:$8 sps:$4 sm:$0xff]  }
  0x68   : > { %1477 = vmatprep.subr.bf16.mxu0 %v4845_v0  ;;  %4387 = vmatprep.subr.bf16.mxu1 %v4845_v0 }
  0x6b   : > { %1478 = vmatpush2.bf16.msra.mxu0 %v4499_v13  ;;  %4403 = vmatpush2.bf16.msra.mxu1 %v4499_v13  ;;  %v4595_v13 = vld [vmem:[%s4993_s6 + $0xf4] ss:$8 sps:$4 sm:$0xff]  }
  0x6c   : > { %1479 = vmatprep.subr.bf16.mxu0 %v4845_v0  ;;  %4388 = vmatprep.subr.bf16.mxu1 %v4845_v0 }
  0x6f   : > { %1480 = vmatpush2.bf16.msra.mxu0 %v4500_v14  ;;  %4404 = vmatpush2.bf16.msra.mxu1 %v4500_v14  ;;  %v4597_v14 = vld [vmem:[%s4993_s6 + $0x2f4] ss:$8 sps:$4 sm:$0xff]  }
  0x70   : > { %1481 = vmatprep.subr.bf16.mxu0 %v4845_v0  ;;  %4389 = vmatprep.subr.bf16.mxu1 %v4845_v0 }
  0x73   : > { %1482 = vmatpush2.bf16.msra.mxu0 %v4501_v15  ;;  %4405 = vmatpush2.bf16.msra.mxu1 %v4501_v15  ;;  %v4599_v15 = vld [vmem:[%s4993_s6 + $0xf0] ss:$8 sps:$4 sm:$0xff]  }
  0x74   : > { %1483 = vmatprep.subr.bf16.mxu0 %v4845_v0  ;;  %4390 = vmatprep.subr.bf16.mxu1 %v4845_v0 }
  0x77   : > { %1484 = vmatpush2.bf16.msra.mxu0 %v4502_v16  ;;  %4406 = vmatpush2.bf16.msra.mxu1 %v4502_v16  ;;  %v4600_v16 = vld [vmem:[%s4993_s6 + $0x2f0] ss:$8 sps:$4 sm:$0xff]  }
  0x78   : > { %1485 = vmatprep.subr.bf16.mxu0 %v4845_v0  ;;  %4391 = vmatprep.subr.bf16.mxu1 %v4845_v0 }
  0x7b   : > { %1486 = vmatpush2.bf16.msra.mxu0 %v4503_v17  ;;  %4407 = vmatpush2.bf16.msra.mxu1 %v4503_v17  ;;  %v4601_v17 = vld [vmem:[%s4993_s6 + $0x104] ss:$8 sps:$4 sm:$0xff]  }
  0x7c   : > { %1487 = vmatprep.subr.bf16.mxu0 %v4845_v0  ;;  %4392 = vmatprep.subr.bf16.mxu1 %v4845_v0  ;;  %v4576_v0 = vld [vmem:[%s4993_s6 + $0x2b0] ss:$8 sps:$4 sm:$0xff]  }
  0x7f   : > { %1488 = vmatpush2.bf16.msra.mxu0 %v4504_v18  ;;  %4408 = vmatpush2.bf16.msra.mxu1 %v4504_v18  ;;  %v4603_v18 = vld [vmem:[%s4993_s6 + $0x304] ss:$8 sps:$4 sm:$0xff]  }
  0x82   : > { %1490 = vmatmul.mubr.bf16.vlgmr.msra.gmra.mxu0 %v4505_v19  ;;  %1746 = vmatmul.mubr.bf16.vlgmr.msra.gmra.mxu1 %v4508_v20  ;;  %v4605_v19 = vld [vmem:[%s4993_s6 + $0x100] ss:$8 sps:$4 sm:$0xff]  }
  0x83   : > { %1497 = vmatprep.mubr.bf16.mxu0 %v4511_v21  ;;  %1753 = vmatprep.mubr.bf16.mxu1 %v4513_v22  ;;  %v4606_v20 = vld [vmem:[%s4993_s6 + $0x300] ss:$8 sps:$4 sm:$0xff]   ;;  %v4607_v21 = vld [vmem:[%s4993_s6 + $0x114] ss:$8 sps:$4 sm:$0xff]  }
  0x84   : > { %v4609_v22 = vld [vmem:[%s4993_s6 + $0x314] ss:$8 sps:$4 sm:$0xff]  }
  0x8a   : > { %1498 = vmatmul.mubr.bf16.gmra.mxu0 %v4515_v23  ;;  %1754 = vmatmul.mubr.bf16.gmra.mxu1 %v4516_v24  ;;  %v4611_v23 = vld [vmem:[%s4993_s6 + $0x110] ss:$8 sps:$4 sm:$0xff]  }
  0x8b   : > { %1505 = vmatprep.mubr.bf16.mxu0 %v4517_v25  ;;  %1761 = vmatprep.mubr.bf16.mxu1 %v4519_v26  ;;  %v4612_v24 = vld [vmem:[%s4993_s6 + $0x310] ss:$8 sps:$4 sm:$0xff]   ;;  %v4613_v25 = vld [vmem:[%s4993_s6 + $0x124] ss:$8 sps:$4 sm:$0xff]  }
  0x8c   : > { %v4615_v26 = vld [vmem:[%s4993_s6 + $0x324] ss:$8 sps:$4 sm:$0xff]  }
  0x92   : > { %1506 = vmatmul.mubr.bf16.gmra.mxu0 %v4521_v27  ;;  %1762 = vmatmul.mubr.bf16.gmra.mxu1 %v4522_v28  ;;  %v4617_v27 = vld [vmem:[%s4993_s6 + $0x120] ss:$8 sps:$4 sm:$0xff]  }
  0x93   : > { %1513 = vmatprep.mubr.bf16.mxu0 %v4523_v29  ;;  %1769 = vmatprep.mubr.bf16.mxu1 %v4525_v30  ;;  %v4618_v28 = vld [vmem:[%s4993_s6 + $0x320] ss:$8 sps:$4 sm:$0xff]   ;;  %v4619_v29 = vld [vmem:[%s4993_s6 + $0x134] ss:$8 sps:$4 sm:$0xff]  }
  0x94   : > { %v4621_v30 = vld [vmem:[%s4993_s6 + $0x334] ss:$8 sps:$4 sm:$0xff]  }
  0x9a   : > { %1514 = vmatmul.mubr.bf16.gmra.mxu0 %v4527_v31  ;;  %1770 = vmatmul.mubr.bf16.gmra.mxu1 %v4528_v32  ;;  %v4623_v31 = vld [vmem:[%s4993_s6 + $0x130] ss:$8 sps:$4 sm:$0xff]  }
  0x9b   : > { %1521 = vmatprep.mubr.bf16.mxu0 %v4529_v33  ;;  %1777 = vmatprep.mubr.bf16.mxu1 %v4531_v34  ;;  %v4624_v32 = vld [vmem:[%s4993_s6 + $0x330] ss:$8 sps:$4 sm:$0xff]   ;;  %v4625_v33 = vld [vmem:[%s4993_s6 + $0x144] ss:$8 sps:$4 sm:$0xff]  }
  0x9c   : > { %v4627_v34 = vld [vmem:[%s4993_s6 + $0x344] ss:$8 sps:$4 sm:$0xff]  }
  0xa2   : > { %1522 = vmatmul.mubr.bf16.gmra.mxu0 %v4533_v35  ;;  %1778 = vmatmul.mubr.bf16.gmra.mxu1 %v4534_v36  ;;  %v4629_v35 = vld [vmem:[%s4993_s6 + $0x140] ss:$8 sps:$4 sm:$0xff]  }
  0xa3   : > { %1529 = vmatprep.mubr.bf16.mxu0 %v4535_v37  ;;  %1785 = vmatprep.mubr.bf16.mxu1 %v4537_v38  ;;  %v4630_v36 = vld [vmem:[%s4993_s6 + $0x340] ss:$8 sps:$4 sm:$0xff]   ;;  %v4631_v37 = vld [vmem:[%s4993_s6 + $0x154] ss:$8 sps:$4 sm:$0xff]  }
  0xa4   : > { %v4633_v38 = vld [vmem:[%s4993_s6 + $0x354] ss:$8 sps:$4 sm:$0xff]  }
  0xaa   : > { %1530 = vmatmul.mubr.bf16.gmra.mxu0 %v4539_v39  ;;  %1786 = vmatmul.mubr.bf16.gmra.mxu1 %v4540_v40  ;;  %v4635_v39 = vld [vmem:[%s4993_s6 + $0x150] ss:$8 sps:$4 sm:$0xff]  }
  0xab   : > { %1537 = vmatprep.mubr.bf16.mxu0 %v4541_v41  ;;  %1793 = vmatprep.mubr.bf16.mxu1 %v4543_v42  ;;  %v4636_v40 = vld [vmem:[%s4993_s6 + $0x350] ss:$8 sps:$4 sm:$0xff]   ;;  %v4637_v41 = vld [vmem:[%s4993_s6 + $0x164] ss:$8 sps:$4 sm:$0xff]  }
  0xac   : > { %v4639_v42 = vld [vmem:[%s4993_s6 + $0x364] ss:$8 sps:$4 sm:$0xff]  }
  0xb2   : > { %1538 = vmatmul.mubr.bf16.gmra.mxu0 %v4545_v43  ;;  %1794 = vmatmul.mubr.bf16.gmra.mxu1 %v4546_v44  ;;  %v4641_v43 = vld [vmem:[%s4993_s6 + $0x160] ss:$8 sps:$4 sm:$0xff]  }
  0xb3   : > { %1545 = vmatprep.mubr.bf16.mxu0 %v4547_v45  ;;  %1801 = vmatprep.mubr.bf16.mxu1 %v4549_v46  ;;  %v4642_v44 = vld [vmem:[%s4993_s6 + $0x360] ss:$8 sps:$4 sm:$0xff]   ;;  %v4643_v45 = vld [vmem:[%s4993_s6 + $0x174] ss:$8 sps:$4 sm:$0xff]  }
  0xb4   : > { %v4645_v46 = vld [vmem:[%s4993_s6 + $0x374] ss:$8 sps:$4 sm:$0xff]  }
  0xba   : > { %1546 = vmatmul.mubr.bf16.gmra.mxu0 %v4551_v47  ;;  %1802 = vmatmul.mubr.bf16.gmra.mxu1 %v4552_v48  ;;  %v4647_v47 = vld [vmem:[%s4993_s6 + $0x170] ss:$8 sps:$4 sm:$0xff]  }
  0xbb   : > { %1553 = vmatprep.mubr.bf16.mxu0 %v4553_v49  ;;  %1809 = vmatprep.mubr.bf16.mxu1 %v4555_v50  ;;  %v4648_v48 = vld [vmem:[%s4993_s6 + $0x370] ss:$8 sps:$4 sm:$0xff]   ;;  %v4649_v49 = vld [vmem:[%s4993_s6 + $0x184] ss:$8 sps:$4 sm:$0xff]  }
  0xbc   : > { %v4651_v50 = vld [vmem:[%s4993_s6 + $0x384] ss:$8 sps:$4 sm:$0xff]  }
  0xc2   : > { %1554 = vmatmul.mubr.bf16.gmra.mxu0 %v4557_v51  ;;  %1810 = vmatmul.mubr.bf16.gmra.mxu1 %v4558_v52  ;;  %v4653_v51 = vld [vmem:[%s4993_s6 + $0x180] ss:$8 sps:$4 sm:$0xff]  }
  0xc3   : > { %1561 = vmatprep.mubr.bf16.mxu0 %v4559_v53  ;;  %1817 = vmatprep.mubr.bf16.mxu1 %v4561_v54  ;;  %v4654_v52 = vld [vmem:[%s4993_s6 + $0x380] ss:$8 sps:$4 sm:$0xff]   ;;  %v4655_v53 = vld [vmem:[%s4993_s6 + $0x194] ss:$8 sps:$4 sm:$0xff]  }
  0xc4   : > { %v4657_v54 = vld [vmem:[%s4993_s6 + $0x394] ss:$8 sps:$4 sm:$0xff]  }
  0xca   : > { %1562 = vmatmul.mubr.bf16.gmra.mxu0 %v4563_v55  ;;  %1818 = vmatmul.mubr.bf16.gmra.mxu1 %v4564_v56  ;;  %v5140_v55 = vld [vmem:[%s5563_s2] ss:$0 sm:$0xff] }
  0xcb   : > { %1569 = vmatprep.mubr.bf16.mxu0 %v4565_v57  ;;  %1825 = vmatprep.mubr.bf16.mxu1 %v4567_v58 }
  0xd2   : > { %1570 = vmatmul.mubr.bf16.gmra.mxu0 %v4569_v59  ;;  %1826 = vmatmul.mubr.bf16.gmra.mxu1 %v4570_v60  ;;  %v5146_v59 = vld [vmem:[%s5564_s3] ss:$0 sm:$0xff] }
  0xd3   : > { %1577 = vmatprep.mubr.bf16.mxu0 %v4571_v61  ;;  %1833 = vmatprep.mubr.bf16.mxu1 %v4573_v62 }
  0xda   : > { %1578 = vmatmul.mubr.bf16.gmra.mxu0 %v4575_v63  ;;  %1834 = vmatmul.mubr.bf16.gmra.mxu1 %v4576_v0 }
  0xdb   : > { %1585 = vmatprep.mubr.bf16.mxu0 %v4577_v1  ;;  %1841 = vmatprep.mubr.bf16.mxu1 %v4579_v2 }
  0xe2   : > { %1586 = vmatmul.mubr.bf16.gmra.mxu0 %v4581_v3  ;;  %1842 = vmatmul.mubr.bf16.gmra.mxu1 %v4582_v4  ;;  %v4659_v3 = vld [vmem:[%s4993_s6 + $0x190] ss:$8 sps:$4 sm:$0xff]  }
  0xe3   : > { %1593 = vmatprep.mubr.bf16.mxu0 %v4583_v5  ;;  %1849 = vmatprep.mubr.bf16.mxu1 %v4585_v6  ;;  %v4660_v4 = vld [vmem:[%s4993_s6 + $0x390] ss:$8 sps:$4 sm:$0xff]  }
  0xea   : > { %1594 = vmatmul.mubr.bf16.gmra.mxu0 %v4587_v7  ;;  %1850 = vmatmul.mubr.bf16.gmra.mxu1 %v4588_v8  ;;  %v4661_v7 = vld [vmem:[%s4993_s6 + $0x1a4] ss:$8 sps:$4 sm:$0xff]  }
  0xeb   : > { %1601 = vmatprep.mubr.bf16.mxu0 %v4589_v9  ;;  %1857 = vmatprep.mubr.bf16.mxu1 %v4591_v10  ;;  %v4663_v8 = vld [vmem:[%s4993_s6 + $0x3a4] ss:$8 sps:$4 sm:$0xff]  }
  0xf2   : > { %1602 = vmatmul.mubr.bf16.gmra.mxu0 %v4593_v11  ;;  %1858 = vmatmul.mubr.bf16.gmra.mxu1 %v4594_v12 }
  0xf3   : > { %1609 = vmatprep.mubr.bf16.mxu0 %v4595_v13  ;;  %1865 = vmatprep.mubr.bf16.mxu1 %v4597_v14 }
  0xfa   : > { %1610 = vmatmul.mubr.bf16.gmra.mxu0 %v4599_v15  ;;  %1866 = vmatmul.mubr.bf16.gmra.mxu1 %v4600_v16 }
  0xfb   : > { %1617 = vmatprep.mubr.bf16.mxu0 %v4601_v17  ;;  %1873 = vmatprep.mubr.bf16.mxu1 %v4603_v18 }
 0x102   : > { %1618 = vmatmul.mubr.bf16.gmra.mxu0 %v4605_v19  ;;  %1874 = vmatmul.mubr.bf16.gmra.mxu1 %v4606_v20 }
 0x103   : > { %1625 = vmatprep.mubr.bf16.mxu0 %v4607_v21  ;;  %1881 = vmatprep.mubr.bf16.mxu1 %v4609_v22 }
 0x10a   : > { %1626 = vmatmul.mubr.bf16.gmra.mxu0 %v4611_v23  ;;  %1882 = vmatmul.mubr.bf16.gmra.mxu1 %v4612_v24 }
 0x10b   : > { %1633 = vmatprep.mubr.bf16.mxu0 %v4613_v25  ;;  %1889 = vmatprep.mubr.bf16.mxu1 %v4615_v26 }
 0x112   : > { %1634 = vmatmul.mubr.bf16.gmra.mxu0 %v4617_v27  ;;  %1890 = vmatmul.mubr.bf16.gmra.mxu1 %v4618_v28 }
 0x113   : > { %1641 = vmatprep.mubr.bf16.mxu0 %v4619_v29  ;;  %1897 = vmatprep.mubr.bf16.mxu1 %v4621_v30  ;;  %v4665_v29 = vld [vmem:[%s4993_s6 + $0x1a0] ss:$8 sps:$4 sm:$0xff]  }
 0x114   : > { %v4666_v30 = vld [vmem:[%s4993_s6 + $0x3a0] ss:$8 sps:$4 sm:$0xff]  }
 0x11a   : > { %1642 = vmatmul.mubr.bf16.gmra.mxu0 %v4623_v31  ;;  %1898 = vmatmul.mubr.bf16.gmra.mxu1 %v4624_v32 }
 0x11b   : > { %1649 = vmatprep.mubr.bf16.mxu0 %v4625_v33  ;;  %1905 = vmatprep.mubr.bf16.mxu1 %v4627_v34  ;;  %v4667_v33 = vld [vmem:[%s4993_s6 + $0x1b4] ss:$8 sps:$4 sm:$0xff]  }
 0x11c   : > { %v4669_v34 = vld [vmem:[%s4993_s6 + $0x3b4] ss:$8 sps:$4 sm:$0xff]  }
 0x122   : > { %1650 = vmatmul.mubr.bf16.gmra.mxu0 %v4629_v35  ;;  %1906 = vmatmul.mubr.bf16.gmra.mxu1 %v4630_v36 }
 0x123   : > { %1657 = vmatprep.mubr.bf16.mxu0 %v4631_v37  ;;  %1913 = vmatprep.mubr.bf16.mxu1 %v4633_v38 }
 0x12a   : > { %1658 = vmatmul.mubr.bf16.gmra.mxu0 %v4635_v39  ;;  %1914 = vmatmul.mubr.bf16.gmra.mxu1 %v4636_v40 }
 0x12b   : > { %1665 = vmatprep.mubr.bf16.mxu0 %v4637_v41  ;;  %1921 = vmatprep.mubr.bf16.mxu1 %v4639_v42 }
 0x132   : > { %1666 = vmatmul.mubr.bf16.gmra.mxu0 %v4641_v43  ;;  %1922 = vmatmul.mubr.bf16.gmra.mxu1 %v4642_v44 }
 0x133   : > { %1673 = vmatprep.mubr.bf16.mxu0 %v4643_v45  ;;  %1929 = vmatprep.mubr.bf16.mxu1 %v4645_v46 }
 0x13a   : > { %1674 = vmatmul.mubr.bf16.gmra.mxu0 %v4647_v47  ;;  %1930 = vmatmul.mubr.bf16.gmra.mxu1 %v4648_v48 }
 0x13b   : > { %1681 = vmatprep.mubr.bf16.mxu0 %v4649_v49  ;;  %1937 = vmatprep.mubr.bf16.mxu1 %v4651_v50 }
 0x142   : > { %v1491_v56 = vpop.f32.mrf.mxu0  ;;  %1682 = vmatmul.mubr.bf16.gmra.mxu0 %v4653_v51  ;;  %v1747_v57 = vpop.f32.mrf.mxu1  ;;  %1938 = vmatmul.mubr.bf16.gmra.mxu1 %v4654_v52 }
 0x143   : > { %v2396_v58 = vmul.f32 %v5140_v55, %v1491_v56  ;;  %v2460_v60 = vmul.f32 %v5140_v55, %v1747_v57  ;;  %1689 = vmatprep.mubr.bf16.mxu0 %v4655_v53  ;;  %1945 = vmatprep.mubr.bf16.mxu1 %v4657_v54  ;;  %v4671_v56 = vld [vmem:[%s4993_s6 + $0x1b0] ss:$8 sps:$4 sm:$0xff]  }
 0x144   : > { %v1493_v61 = vpop.f32.mrf.mxu0  ;;  %v1749_v62 = vpop.f32.mrf.mxu1  ;;  %v4672_v57 = vld [vmem:[%s4993_s6 + $0x3b0] ss:$8 sps:$4 sm:$0xff]  }
 0x145   : > { %v2531_v63 = vadd.f32 %v5146_v59, %v2396_v58  ;;  %v2595_v0 = vadd.f32 %v5146_v59, %v2460_v60  ;;  %v4675_v61 = vld [vmem:[%s4993_s6 + $0x1c4] ss:$8 sps:$4 sm:$0xff]  }
 0x146   : > { %v1494_v1 = vpop.f32.mrf.mxu0  ;;  %v1750_v2 = vpop.f32.mrf.mxu1  ;;  %v4678_v62 = vld [vmem:[%s4993_s6 + $0x3c4] ss:$8 sps:$4 sm:$0xff]  }
 0x147   : > { %v2397_v5 = vmul.f32 %v5140_v55, %v1494_v1  ;;  %v2461_v6 = vmul.f32 %v5140_v55, %v1750_v2  ;;  %v2659_v13 = vmax.f32 %v2531_v63, 0.0  ;;  %v2723_v14 = vmax.f32 %v2595_v0, 0.0 }
 0x148   : > { %v1496_v9 = vpop.f32.mrf.mxu0  ;;  %v1752_v10 = vpop.f32.mrf.mxu1 }
 0x149   : > { %v2532_v11 = vadd.f32 %v5146_v59, %v2397_v5  ;;  %v2596_v12 = vadd.f32 %v5146_v59, %v2461_v6 }
 0x14a   : > { %v1499_v15 = vpop.f32.mrf.mxu0  ;;  %1690 = vmatmul.mubr.bf16.gmra.mxu0 %v4659_v3  ;;  %v1755_v16 = vpop.f32.mrf.mxu1  ;;  %1946 = vmatmul.mubr.bf16.gmra.mxu1 %v4660_v4 }
 0x14b   : > { %v2660_v17 = vmax.f32 %v2532_v11, 0.0  ;;  %v2724_v18 = vmax.f32 %v2596_v12, 0.0  ;;  %v2398_v19 = vmul.f32 %v5140_v55, %v1499_v15  ;;  %v2462_v20 = vmul.f32 %v5140_v55, %v1755_v16  ;;  %1697 = vmatprep.mubr.bf16.mxu0 %v4661_v7  ;;  %1953 = vmatprep.mubr.bf16.mxu1 %v4663_v8 }
 0x14c   : > { %v1501_v21 = vpop.f32.mrf.mxu0  ;;  %v1757_v22 = vpop.f32.mrf.mxu1 }
 0x14d   : > { %v3997_v23 = vpack.c.bf16 %v2660_v17, %v2659_v13  ;;  %v4157_v24 = vpack.c.bf16 %v2724_v18, %v2723_v14  ;;  %v2533_v25 = vadd.f32 %v5146_v59, %v2398_v19  ;;  %v2597_v26 = vadd.f32 %v5146_v59, %v2462_v20  ;;  %v4673_v19 = vld [vmem:[%s4993_s6 + $0x1c0] ss:$8 sps:$4 sm:$0xff]  }
 0x14e   : > { %v1502_v27 = vpop.f32.mrf.mxu0  ;;  %v1758_v28 = vpop.f32.mrf.mxu1  ;;  %v4676_v20 = vld [vmem:[%s4993_s6 + $0x3c0] ss:$8 sps:$4 sm:$0xff]  }
 0x14f   : > { %3998 = vst [vmem:[%s5166_s9] sm:$0xff] %v3997_v23   ;;  %4345 = vst [vmem:[%s5166_s9 + $0x100] sm:$0xff] %v4157_v24   ;;  %v2399_v31 = vmul.f32 %v5140_v55, %v1502_v27  ;;  %v2463_v32 = vmul.f32 %v5140_v55, %v1758_v28  ;;  %v2661_v39 = vmax.f32 %v2533_v25, 0.0  ;;  %v2725_v40 = vmax.f32 %v2597_v26, 0.0  ;;  %v4681_v23 = vld [vmem:[%s4993_s6 + $0x1d4] ss:$8 sps:$4 sm:$0xff]  }
 0x150   : > { %v1504_v35 = vpop.f32.mrf.mxu0  ;;  %v1760_v36 = vpop.f32.mrf.mxu1  ;;  %v4684_v24 = vld [vmem:[%s4993_s6 + $0x3d4] ss:$8 sps:$4 sm:$0xff]  }
 0x151   : > { %v2534_v37 = vadd.f32 %v5146_v59, %v2399_v31  ;;  %v2598_v38 = vadd.f32 %v5146_v59, %v2463_v32 }
 0x152   : > { %v1507_v41 = vpop.f32.mrf.mxu0  ;;  %1698 = vmatmul.mubr.bf16.gmra.mxu0 %v4665_v29  ;;  %v1763_v42 = vpop.f32.mrf.mxu1  ;;  %1954 = vmatmul.mubr.bf16.gmra.mxu1 %v4666_v30 }
 0x153   : > { %v2662_v43 = vmax.f32 %v2534_v37, 0.0  ;;  %v2726_v44 = vmax.f32 %v2598_v38, 0.0  ;;  %v2400_v45 = vmul.f32 %v5140_v55, %v1507_v41  ;;  %v2464_v46 = vmul.f32 %v5140_v55, %v1763_v42  ;;  %1705 = vmatprep.mubr.bf16.mxu0 %v4667_v33  ;;  %1961 = vmatprep.mubr.bf16.mxu1 %v4669_v34 }
 0x154   : > { %v1509_v47 = vpop.f32.mrf.mxu0  ;;  %v1765_v48 = vpop.f32.mrf.mxu1 }
 0x155   : > { %v4002_v49 = vpack.c.bf16 %v2662_v43, %v2661_v39  ;;  %v4162_v50 = vpack.c.bf16 %v2726_v44, %v2725_v40  ;;  %v2535_v51 = vadd.f32 %v5146_v59, %v2400_v45  ;;  %v2599_v52 = vadd.f32 %v5146_v59, %v2464_v46  ;;  %v4679_v45 = vld [vmem:[%s4993_s6 + $0x1d0] ss:$8 sps:$4 sm:$0xff]  }
 0x156   : > { %v1510_v53 = vpop.f32.mrf.mxu0  ;;  %v1766_v54 = vpop.f32.mrf.mxu1  ;;  %v4682_v46 = vld [vmem:[%s4993_s6 + $0x3d0] ss:$8 sps:$4 sm:$0xff]  }
 0x157   : > { %4314 = vst [vmem:[%s5166_s9 + $0x8] sm:$0xff] %v4002_v49   ;;  %4346 = vst [vmem:[%s5166_s9 + $0x108] sm:$0xff] %v4162_v50   ;;  %v2401_v58 = vmul.f32 %v5140_v55, %v1510_v53  ;;  %v2465_v60 = vmul.f32 %v5140_v55, %v1766_v54  ;;  %v2663_v3 = vmax.f32 %v2535_v51, 0.0  ;;  %v2727_v4 = vmax.f32 %v2599_v52, 0.0  ;;  %v4687_v49 = vld [vmem:[%s4993_s6 + $0x1e4] ss:$8 sps:$4 sm:$0xff]  }
 0x158   : > { %v1512_v63 = vpop.f32.mrf.mxu0  ;;  %v1768_v0 = vpop.f32.mrf.mxu1  ;;  %v4690_v50 = vld [vmem:[%s4993_s6 + $0x3e4] ss:$8 sps:$4 sm:$0xff]  }
 0x159   : > { %v2536_v1 = vadd.f32 %v5146_v59, %v2401_v58  ;;  %v2600_v2 = vadd.f32 %v5146_v59, %v2465_v60 }
 0x15a   : > { %v1515_v5 = vpop.f32.mrf.mxu0  ;;  %1706 = vmatmul.mubr.bf16.gmra.mxu0 %v4671_v56  ;;  %v1771_v6 = vpop.f32.mrf.mxu1  ;;  %1962 = vmatmul.mubr.bf16.gmra.mxu1 %v4672_v57 }
 0x15b   : > { %v2664_v7 = vmax.f32 %v2536_v1, 0.0  ;;  %v2728_v8 = vmax.f32 %v2600_v2, 0.0  ;;  %v2402_v9 = vmul.f32 %v5140_v55, %v1515_v5  ;;  %v2466_v10 = vmul.f32 %v5140_v55, %v1771_v6  ;;  %1713 = vmatprep.mubr.bf16.mxu0 %v4675_v61  ;;  %1969 = vmatprep.mubr.bf16.mxu1 %v4678_v62 }
 0x15c   : > { %v1517_v11 = vpop.f32.mrf.mxu0  ;;  %v1773_v12 = vpop.f32.mrf.mxu1 }
 0x15d   : > { %v4007_v13 = vpack.c.bf16 %v2664_v7, %v2663_v3  ;;  %v4167_v14 = vpack.c.bf16 %v2728_v8, %v2727_v4  ;;  %v2537_v15 = vadd.f32 %v5146_v59, %v2402_v9  ;;  %v2601_v16 = vadd.f32 %v5146_v59, %v2466_v10  ;;  %v4685_v9 = vld [vmem:[%s4993_s6 + $0x1e0] ss:$8 sps:$4 sm:$0xff]  }
 0x15e   : > { %v1518_v17 = vpop.f32.mrf.mxu0  ;;  %v1774_v18 = vpop.f32.mrf.mxu1  ;;  %v4688_v10 = vld [vmem:[%s4993_s6 + $0x3e0] ss:$8 sps:$4 sm:$0xff]  }
 0x15f   : > { %4315 = vst [vmem:[%s5166_s9 + $0x10] sm:$0xff] %v4007_v13   ;;  %4347 = vst [vmem:[%s5166_s9 + $0x110] sm:$0xff] %v4167_v14   ;;  %v2403_v21 = vmul.f32 %v5140_v55, %v1518_v17  ;;  %v2467_v22 = vmul.f32 %v5140_v55, %v1774_v18  ;;  %v2665_v29 = vmax.f32 %v2537_v15, 0.0  ;;  %v2729_v30 = vmax.f32 %v2601_v16, 0.0  ;;  %v4693_v13 = vld [vmem:[%s4993_s6 + $0x1f4] ss:$8 sps:$4 sm:$0xff]  }
 0x160   : > { %v1520_v25 = vpop.f32.mrf.mxu0  ;;  %v1776_v26 = vpop.f32.mrf.mxu1  ;;  %v4696_v14 = vld [vmem:[%s4993_s6 + $0x3f4] ss:$8 sps:$4 sm:$0xff]  }
 0x161   : > { %v2538_v27 = vadd.f32 %v5146_v59, %v2403_v21  ;;  %v2602_v28 = vadd.f32 %v5146_v59, %v2467_v22 }
 0x162   : > { %v1523_v31 = vpop.f32.mrf.mxu0  ;;  %1714 = vmatmul.mubr.bf16.gmra.mxu0 %v4673_v19  ;;  %v1779_v32 = vpop.f32.mrf.mxu1  ;;  %1970 = vmatmul.mubr.bf16.gmra.mxu1 %v4676_v20 }
 0x163   : > { %v2666_v33 = vmax.f32 %v2538_v27, 0.0  ;;  %v2730_v34 = vmax.f32 %v2602_v28, 0.0  ;;  %v2404_v35 = vmul.f32 %v5140_v55, %v1523_v31  ;;  %v2468_v36 = vmul.f32 %v5140_v55, %v1779_v32  ;;  %1721 = vmatprep.mubr.bf16.mxu0 %v4681_v23  ;;  %1977 = vmatprep.mubr.bf16.mxu1 %v4684_v24 }
 0x164   : > { %v1525_v37 = vpop.f32.mrf.mxu0  ;;  %v1781_v38 = vpop.f32.mrf.mxu1 }
 0x165   : > { %v4012_v39 = vpack.c.bf16 %v2666_v33, %v2665_v29  ;;  %v4172_v40 = vpack.c.bf16 %v2730_v34, %v2729_v30  ;;  %v2539_v41 = vadd.f32 %v5146_v59, %v2404_v35  ;;  %v2603_v42 = vadd.f32 %v5146_v59, %v2468_v36  ;;  %v4691_v35 = vld [vmem:[%s4993_s6 + $0x1f0] ss:$8 sps:$4 sm:$0xff]  }
 0x166   : > { %v1526_v43 = vpop.f32.mrf.mxu0  ;;  %v1782_v44 = vpop.f32.mrf.mxu1  ;;  %v4694_v36 = vld [vmem:[%s4993_s6 + $0x3f0] ss:$8 sps:$4 sm:$0xff]   ;;  %s4753_s6 = scalar_lea.vmem %s5511_s12, 8192 }
 0x167   : > { %4316 = vst [vmem:[%s5166_s9 + $0x18] sm:$0xff] %v4012_v39   ;;  %4348 = vst [vmem:[%s5166_s9 + $0x118] sm:$0xff] %v4172_v40   ;;  %v2405_v47 = vmul.f32 %v5140_v55, %v1526_v43  ;;  %v2469_v48 = vmul.f32 %v5140_v55, %v1782_v44  ;;  %v2667_v56 = vmax.f32 %v2539_v41, 0.0  ;;  %v2731_v57 = vmax.f32 %v2603_v42, 0.0  ;;  %p4754_p1 = scmp.ne.s32.totalorder %s5511_s12, %s4753_s6  ;;  %p4761_p2 = scmp.lt.s32.totalorder %s4759_s27, %s4753_s6 }
 0x168   : > { %v1528_v51 = vpop.f32.mrf.mxu0  ;;  %v1784_v52 = vpop.f32.mrf.mxu1 }
 0x169   : > { %v2540_v53 = vadd.f32 %v5146_v59, %v2405_v47  ;;  %v2604_v54 = vadd.f32 %v5146_v59, %v2469_v48  ;;  %p4755_p8 = pnand %p4754_p1, %p4961_p13  ;;  %p4762_p3 = por %p4761_p2, %p4760_p0 }
 0x16a   : > { %v1531_v58 = vpop.f32.mrf.mxu0  ;;  %1722 = vmatmul.mubr.bf16.gmra.mxu0 %v4679_v45  ;;  %v1787_v60 = vpop.f32.mrf.mxu1  ;;  %1978 = vmatmul.mubr.bf16.gmra.mxu1 %v4682_v46 }
 0x16b   : > { %v2668_v61 = vmax.f32 %v2540_v53, 0.0  ;;  %v2732_v62 = vmax.f32 %v2604_v54, 0.0  ;;  %v2406_v63 = vmul.f32 %v5140_v55, %v1531_v58  ;;  %v2470_v0 = vmul.f32 %v5140_v55, %v1787_v60  ;;  %1729 = vmatprep.mubr.bf16.mxu0 %v4687_v49  ;;  %1985 = vmatprep.mubr.bf16.mxu1 %v4690_v50  ;;  %p4756_p10 = pneg %p4755_p8 }
 0x16c   : > { %v1533_v1 = vpop.f32.mrf.mxu0  ;;  %v1789_v2 = vpop.f32.mrf.mxu1 }
 0x16d   : > { %v4017_v3 = vpack.c.bf16 %v2668_v61, %v2667_v56  ;;  %v4177_v4 = vpack.c.bf16 %v2732_v62, %v2731_v57  ;;  %v2541_v5 = vadd.f32 %v5146_v59, %v2406_v63  ;;  %v2605_v6 = vadd.f32 %v5146_v59, %v2470_v0  ;;  %p4763_p5 = pnand %p4762_p3, %p4756_p10 }
 0x16e   : > { %v1534_v7 = vpop.f32.mrf.mxu0  ;;  %v1790_v8 = vpop.f32.mrf.mxu1 }
 0x16f   : > { %4317 = vst [vmem:[%s5166_s9 + $0x20] sm:$0xff] %v4017_v3   ;;  %4349 = vst [vmem:[%s5166_s9 + $0x120] sm:$0xff] %v4177_v4   ;;  %v2407_v11 = vmul.f32 %v5140_v55, %v1534_v7  ;;  %v2471_v12 = vmul.f32 %v5140_v55, %v1790_v8  ;;  %v2669_v19 = vmax.f32 %v2541_v5, 0.0  ;;  %v2733_v20 = vmax.f32 %v2605_v6, 0.0 }
 0x170   : > { %v1536_v15 = vpop.f32.mrf.mxu0  ;;  %v1792_v16 = vpop.f32.mrf.mxu1 }
 0x171   : > { %v2542_v17 = vadd.f32 %v5146_v59, %v2407_v11  ;;  %v2606_v18 = vadd.f32 %v5146_v59, %v2471_v12 }
 0x172   : > { %v1539_v21 = vpop.f32.mrf.mxu0  ;;  %1730 = vmatmul.mubr.bf16.gmra.mxu0 %v4685_v9  ;;  %v1795_v22 = vpop.f32.mrf.mxu1  ;;  %1986 = vmatmul.mubr.bf16.gmra.mxu1 %v4688_v10 }
 0x173   : > { %v2670_v23 = vmax.f32 %v2542_v17, 0.0  ;;  %v2734_v24 = vmax.f32 %v2606_v18, 0.0  ;;  %v2408_v25 = vmul.f32 %v5140_v55, %v1539_v21  ;;  %v2472_v26 = vmul.f32 %v5140_v55, %v1795_v22  ;;  %1737 = vmatprep.mubr.bf16.mxu0 %v4693_v13  ;;  %1993 = vmatprep.mubr.bf16.mxu1 %v4696_v14 }
 0x174   : > { %v1541_v27 = vpop.f32.mrf.mxu0  ;;  %v1797_v28 = vpop.f32.mrf.mxu1 }
 0x175   : > { %v4022_v29 = vpack.c.bf16 %v2670_v23, %v2669_v19  ;;  %v4182_v30 = vpack.c.bf16 %v2734_v24, %v2733_v20  ;;  %v2543_v31 = vadd.f32 %v5146_v59, %v2408_v25  ;;  %v2607_v32 = vadd.f32 %v5146_v59, %v2472_v26 }
 0x176   : > { %v1542_v33 = vpop.f32.mrf.mxu0  ;;  %v1798_v34 = vpop.f32.mrf.mxu1 }
 0x177   : > { %4318 = vst [vmem:[%s5166_s9 + $0x28] sm:$0xff] %v4022_v29   ;;  %4350 = vst [vmem:[%s5166_s9 + $0x128] sm:$0xff] %v4182_v30   ;;  %v2409_v37 = vmul.f32 %v5140_v55, %v1542_v33  ;;  %v2473_v38 = vmul.f32 %v5140_v55, %v1798_v34  ;;  %v2671_v43 = vmax.f32 %v2543_v31, 0.0  ;;  %v2735_v44 = vmax.f32 %v2607_v32, 0.0 }
 0x178   : > { %v1544_v39 = vpop.f32.mrf.mxu0  ;;  %v1800_v40 = vpop.f32.mrf.mxu1 }
 0x179   : > { %v2544_v41 = vadd.f32 %v5146_v59, %v2409_v37  ;;  %v2608_v42 = vadd.f32 %v5146_v59, %v2473_v38 }
 0x17a   : > { %v1547_v45 = vpop.f32.mrf.mxu0  ;;  %1738 = vmatmul.mubr.bf16.gmra.mxu0 %v4691_v35  ;;  %v1803_v46 = vpop.f32.mrf.mxu1  ;;  %1994 = vmatmul.mubr.bf16.gmra.mxu1 %v4694_v36 }
 0x17b   : > { %v2672_v47 = vmax.f32 %v2544_v41, 0.0  ;;  %v2736_v48 = vmax.f32 %v2608_v42, 0.0  ;;  %v2410_v49 = vmul.f32 %v5140_v55, %v1547_v45  ;;  %v2474_v50 = vmul.f32 %v5140_v55, %v1803_v46 }
 0x17c   : > { %v1549_v51 = vpop.f32.mrf.mxu0  ;;  %v1805_v52 = vpop.f32.mrf.mxu1 }
 0x17d   : > { %v4027_v53 = vpack.c.bf16 %v2672_v47, %v2671_v43  ;;  %v4187_v54 = vpack.c.bf16 %v2736_v48, %v2735_v44  ;;  %v2545_v56 = vadd.f32 %v5146_v59, %v2410_v49  ;;  %v2609_v57 = vadd.f32 %v5146_v59, %v2474_v50 }
 0x17e   : > { %v1550_v58 = vpop.f32.mrf.mxu0  ;;  %v1806_v60 = vpop.f32.mrf.mxu1 }
 0x17f   : > { %4319 = vst [vmem:[%s5166_s9 + $0x30] sm:$0xff] %v4027_v53   ;;  %4351 = vst [vmem:[%s5166_s9 + $0x130] sm:$0xff] %v4187_v54   ;;  %v2411_v61 = vmul.f32 %v5140_v55, %v1550_v58  ;;  %v2475_v62 = vmul.f32 %v5140_v55, %v1806_v60  ;;  %v2673_v3 = vmax.f32 %v2545_v56, 0.0  ;;  %v2737_v4 = vmax.f32 %v2609_v57, 0.0 }
 0x180   : > { %v1552_v63 = vpop.f32.mrf.mxu0  ;;  %v1808_v0 = vpop.f32.mrf.mxu1 }
 0x181   : > { %v2546_v1 = vadd.f32 %v5146_v59, %v2411_v61  ;;  %v2610_v2 = vadd.f32 %v5146_v59, %v2475_v62 }
 0x182   : > { %v1555_v5 = vpop.f32.mrf.mxu0  ;;  %v1811_v6 = vpop.f32.mrf.mxu1 }
 0x183   : > { %v2674_v7 = vmax.f32 %v2546_v1, 0.0  ;;  %v2738_v8 = vmax.f32 %v2610_v2, 0.0  ;;  %v2412_v9 = vmul.f32 %v5140_v55, %v1555_v5  ;;  %v2476_v10 = vmul.f32 %v5140_v55, %v1811_v6 }
 0x184   : > { %v1557_v11 = vpop.f32.mrf.mxu0  ;;  %v1813_v12 = vpop.f32.mrf.mxu1 }
 0x185   : > { %v4032_v13 = vpack.c.bf16 %v2674_v7, %v2673_v3  ;;  %v4192_v14 = vpack.c.bf16 %v2738_v8, %v2737_v4  ;;  %v2547_v15 = vadd.f32 %v5146_v59, %v2412_v9  ;;  %v2611_v16 = vadd.f32 %v5146_v59, %v2476_v10 }
 0x186   : > { %v1558_v17 = vpop.f32.mrf.mxu0  ;;  %v1814_v18 = vpop.f32.mrf.mxu1 }
 0x187   : > { %4320 = vst [vmem:[%s5166_s9 + $0x38] sm:$0xff] %v4032_v13   ;;  %4352 = vst [vmem:[%s5166_s9 + $0x138] sm:$0xff] %v4192_v14   ;;  %v2413_v19 = vmul.f32 %v5140_v55, %v1558_v17  ;;  %v2477_v20 = vmul.f32 %v5140_v55, %v1814_v18  ;;  %v2675_v25 = vmax.f32 %v2547_v15, 0.0  ;;  %v2739_v26 = vmax.f32 %v2611_v16, 0.0 }
 0x188   : > { %v1560_v21 = vpop.f32.mrf.mxu0  ;;  %v1816_v22 = vpop.f32.mrf.mxu1 }
 0x189   : > { %v2548_v23 = vadd.f32 %v5146_v59, %v2413_v19  ;;  %v2612_v24 = vadd.f32 %v5146_v59, %v2477_v20 }
 0x18a   : > { %v1563_v27 = vpop.f32.mrf.mxu0  ;;  %v1819_v28 = vpop.f32.mrf.mxu1 }
 0x18b   : > { %v2676_v29 = vmax.f32 %v2548_v23, 0.0  ;;  %v2740_v30 = vmax.f32 %v2612_v24, 0.0  ;;  %v2414_v31 = vmul.f32 %v5140_v55, %v1563_v27  ;;  %v2478_v32 = vmul.f32 %v5140_v55, %v1819_v28 }
 0x18c   : > { %v1565_v33 = vpop.f32.mrf.mxu0  ;;  %v1821_v34 = vpop.f32.mrf.mxu1 }
 0x18d   : > { %v4037_v35 = vpack.c.bf16 %v2676_v29, %v2675_v25  ;;  %v4197_v36 = vpack.c.bf16 %v2740_v30, %v2739_v26  ;;  %v2549_v37 = vadd.f32 %v5146_v59, %v2414_v31  ;;  %v2613_v38 = vadd.f32 %v5146_v59, %v2478_v32 }
 0x18e   : > { %v1566_v39 = vpop.f32.mrf.mxu0  ;;  %v1822_v40 = vpop.f32.mrf.mxu1 }
 0x18f   : > { %4321 = vst [vmem:[%s5166_s9 + $0x40] sm:$0xff] %v4037_v35   ;;  %4353 = vst [vmem:[%s5166_s9 + $0x140] sm:$0xff] %v4197_v36   ;;  %v2415_v41 = vmul.f32 %v5140_v55, %v1566_v39  ;;  %v2479_v42 = vmul.f32 %v5140_v55, %v1822_v40  ;;  %v2677_v47 = vmax.f32 %v2549_v37, 0.0  ;;  %v2741_v48 = vmax.f32 %v2613_v38, 0.0 }
 0x190   : > { %v1568_v43 = vpop.f32.mrf.mxu0  ;;  %v1824_v44 = vpop.f32.mrf.mxu1 }
 0x191   : > { %v2550_v45 = vadd.f32 %v5146_v59, %v2415_v41  ;;  %v2614_v46 = vadd.f32 %v5146_v59, %v2479_v42 }
 0x192   : > { %v1571_v49 = vpop.f32.mrf.mxu0  ;;  %v1827_v50 = vpop.f32.mrf.mxu1 }
 0x193   : > { %v2678_v51 = vmax.f32 %v2550_v45, 0.0  ;;  %v2742_v52 = vmax.f32 %v2614_v46, 0.0  ;;  %v2416_v53 = vmul.f32 %v5140_v55, %v1571_v49  ;;  %v2480_v54 = vmul.f32 %v5140_v55, %v1827_v50 }
 0x194   : > { %v1573_v56 = vpop.f32.mrf.mxu0  ;;  %v1829_v57 = vpop.f32.mrf.mxu1 }
 0x195   : > { %v4042_v58 = vpack.c.bf16 %v2678_v51, %v2677_v47  ;;  %v4202_v60 = vpack.c.bf16 %v2742_v52, %v2741_v48  ;;  %v2551_v61 = vadd.f32 %v5146_v59, %v2416_v53  ;;  %v2615_v62 = vadd.f32 %v5146_v59, %v2480_v54 }
 0x196   : > { %v1574_v63 = vpop.f32.mrf.mxu0  ;;  %v1830_v0 = vpop.f32.mrf.mxu1 }
 0x197   : > { %4322 = vst [vmem:[%s5166_s9 + $0x48] sm:$0xff] %v4042_v58   ;;  %4354 = vst [vmem:[%s5166_s9 + $0x148] sm:$0xff] %v4202_v60   ;;  %v2417_v1 = vmul.f32 %v5140_v55, %v1574_v63  ;;  %v2481_v2 = vmul.f32 %v5140_v55, %v1830_v0  ;;  %v2679_v7 = vmax.f32 %v2551_v61, 0.0  ;;  %v2743_v8 = vmax.f32 %v2615_v62, 0.0 }
 0x198   : > { %v1576_v3 = vpop.f32.mrf.mxu0  ;;  %v1832_v4 = vpop.f32.mrf.mxu1 }
 0x199   : > { %v2552_v5 = vadd.f32 %v5146_v59, %v2417_v1  ;;  %v2616_v6 = vadd.f32 %v5146_v59, %v2481_v2 }
 0x19a   : > { %v1579_v9 = vpop.f32.mrf.mxu0  ;;  %v1835_v10 = vpop.f32.mrf.mxu1 }
 0x19b   : > { %v2680_v11 = vmax.f32 %v2552_v5, 0.0  ;;  %v2744_v12 = vmax.f32 %v2616_v6, 0.0  ;;  %v2418_v13 = vmul.f32 %v5140_v55, %v1579_v9  ;;  %v2482_v14 = vmul.f32 %v5140_v55, %v1835_v10 }
 0x19c   : > { %v1581_v15 = vpop.f32.mrf.mxu0  ;;  %v1837_v16 = vpop.f32.mrf.mxu1 }
 0x19d   : > { %v4047_v17 = vpack.c.bf16 %v2680_v11, %v2679_v7  ;;  %v4207_v18 = vpack.c.bf16 %v2744_v12, %v2743_v8  ;;  %v2553_v19 = vadd.f32 %v5146_v59, %v2418_v13  ;;  %v2617_v20 = vadd.f32 %v5146_v59, %v2482_v14 }
 0x19e   : > { %v1582_v21 = vpop.f32.mrf.mxu0  ;;  %v1838_v22 = vpop.f32.mrf.mxu1 }
 0x19f   : > { %4323 = vst [vmem:[%s5166_s9 + $0x50] sm:$0xff] %v4047_v17   ;;  %4355 = vst [vmem:[%s5166_s9 + $0x150] sm:$0xff] %v4207_v18   ;;  %v2419_v23 = vmul.f32 %v5140_v55, %v1582_v21  ;;  %v2483_v24 = vmul.f32 %v5140_v55, %v1838_v22  ;;  %v2681_v29 = vmax.f32 %v2553_v19, 0.0  ;;  %v2745_v30 = vmax.f32 %v2617_v20, 0.0 }
 0x1a0   : > { %v1584_v25 = vpop.f32.mrf.mxu0  ;;  %v1840_v26 = vpop.f32.mrf.mxu1 }
 0x1a1   : > { %v2554_v27 = vadd.f32 %v5146_v59, %v2419_v23  ;;  %v2618_v28 = vadd.f32 %v5146_v59, %v2483_v24 }
 0x1a2   : > { %v1587_v31 = vpop.f32.mrf.mxu0  ;;  %v1843_v32 = vpop.f32.mrf.mxu1 }
 0x1a3   : > { %v2682_v33 = vmax.f32 %v2554_v27, 0.0  ;;  %v2746_v34 = vmax.f32 %v2618_v28, 0.0  ;;  %v2420_v35 = vmul.f32 %v5140_v55, %v1587_v31  ;;  %v2484_v36 = vmul.f32 %v5140_v55, %v1843_v32 }
 0x1a4   : > { %v1589_v37 = vpop.f32.mrf.mxu0  ;;  %v1845_v38 = vpop.f32.mrf.mxu1 }
 0x1a5   : > { %v4052_v39 = vpack.c.bf16 %v2682_v33, %v2681_v29  ;;  %v4212_v40 = vpack.c.bf16 %v2746_v34, %v2745_v30  ;;  %v2555_v41 = vadd.f32 %v5146_v59, %v2420_v35  ;;  %v2619_v42 = vadd.f32 %v5146_v59, %v2484_v36 }
 0x1a6   : > { %v1590_v43 = vpop.f32.mrf.mxu0  ;;  %v1846_v44 = vpop.f32.mrf.mxu1 }
 0x1a7   : > { %4324 = vst [vmem:[%s5166_s9 + $0x58] sm:$0xff] %v4052_v39   ;;  %4356 = vst [vmem:[%s5166_s9 + $0x158] sm:$0xff] %v4212_v40   ;;  %v2421_v45 = vmul.f32 %v5140_v55, %v1590_v43  ;;  %v2485_v46 = vmul.f32 %v5140_v55, %v1846_v44  ;;  %v2683_v51 = vmax.f32 %v2555_v41, 0.0  ;;  %v2747_v52 = vmax.f32 %v2619_v42, 0.0 }
 0x1a8   : > { %v1592_v47 = vpop.f32.mrf.mxu0  ;;  %v1848_v48 = vpop.f32.mrf.mxu1 }
 0x1a9   : > { %v2556_v49 = vadd.f32 %v5146_v59, %v2421_v45  ;;  %v2620_v50 = vadd.f32 %v5146_v59, %v2485_v46 }
 0x1aa   : > { %v1595_v53 = vpop.f32.mrf.mxu0  ;;  %v1851_v54 = vpop.f32.mrf.mxu1 }
 0x1ab   : > { %v2684_v56 = vmax.f32 %v2556_v49, 0.0  ;;  %v2748_v57 = vmax.f32 %v2620_v50, 0.0  ;;  %v2422_v58 = vmul.f32 %v5140_v55, %v1595_v53  ;;  %v2486_v60 = vmul.f32 %v5140_v55, %v1851_v54 }
 0x1ac   : > { %v1597_v61 = vpop.f32.mrf.mxu0  ;;  %v1853_v62 = vpop.f32.mrf.mxu1 }
 0x1ad   : > { %v4057_v63 = vpack.c.bf16 %v2684_v56, %v2683_v51  ;;  %v4217_v0 = vpack.c.bf16 %v2748_v57, %v2747_v52  ;;  %v2557_v1 = vadd.f32 %v5146_v59, %v2422_v58  ;;  %v2621_v2 = vadd.f32 %v5146_v59, %v2486_v60 }
 0x1ae   : > { %v1598_v3 = vpop.f32.mrf.mxu0  ;;  %v1854_v4 = vpop.f32.mrf.mxu1 }
 0x1af   : > { %4325 = vst [vmem:[%s5166_s9 + $0x60] sm:$0xff] %v4057_v63   ;;  %4357 = vst [vmem:[%s5166_s9 + $0x160] sm:$0xff] %v4217_v0   ;;  %v2423_v5 = vmul.f32 %v5140_v55, %v1598_v3  ;;  %v2487_v6 = vmul.f32 %v5140_v55, %v1854_v4  ;;  %v2685_v11 = vmax.f32 %v2557_v1, 0.0  ;;  %v2749_v12 = vmax.f32 %v2621_v2, 0.0 }
 0x1b0   : > { %v1600_v7 = vpop.f32.mrf.mxu0  ;;  %v1856_v8 = vpop.f32.mrf.mxu1 }
 0x1b1   : > { %v2558_v9 = vadd.f32 %v5146_v59, %v2423_v5  ;;  %v2622_v10 = vadd.f32 %v5146_v59, %v2487_v6 }
 0x1b2   : > { %v1603_v13 = vpop.f32.mrf.mxu0  ;;  %v1859_v14 = vpop.f32.mrf.mxu1 }
 0x1b3   : > { %v2686_v15 = vmax.f32 %v2558_v9, 0.0  ;;  %v2750_v16 = vmax.f32 %v2622_v10, 0.0  ;;  %v2424_v17 = vmul.f32 %v5140_v55, %v1603_v13  ;;  %v2488_v18 = vmul.f32 %v5140_v55, %v1859_v14 }
 0x1b4   : > { %v1605_v19 = vpop.f32.mrf.mxu0  ;;  %v1861_v20 = vpop.f32.mrf.mxu1 }
 0x1b5   : > { %v4062_v21 = vpack.c.bf16 %v2686_v15, %v2685_v11  ;;  %v4222_v22 = vpack.c.bf16 %v2750_v16, %v2749_v12  ;;  %v2559_v23 = vadd.f32 %v5146_v59, %v2424_v17  ;;  %v2623_v24 = vadd.f32 %v5146_v59, %v2488_v18 }
 0x1b6   : > { %v1606_v25 = vpop.f32.mrf.mxu0  ;;  %v1862_v26 = vpop.f32.mrf.mxu1 }
 0x1b7   : > { %4326 = vst [vmem:[%s5166_s9 + $0x68] sm:$0xff] %v4062_v21   ;;  %4358 = vst [vmem:[%s5166_s9 + $0x168] sm:$0xff] %v4222_v22   ;;  %v2425_v27 = vmul.f32 %v5140_v55, %v1606_v25  ;;  %v2489_v28 = vmul.f32 %v5140_v55, %v1862_v26  ;;  %v2687_v33 = vmax.f32 %v2559_v23, 0.0  ;;  %v2751_v34 = vmax.f32 %v2623_v24, 0.0 }
 0x1b8   : > { %v1608_v29 = vpop.f32.mrf.mxu0  ;;  %v1864_v30 = vpop.f32.mrf.mxu1 }
 0x1b9   : > { %v2560_v31 = vadd.f32 %v5146_v59, %v2425_v27  ;;  %v2624_v32 = vadd.f32 %v5146_v59, %v2489_v28 }
 0x1ba   : > { %v1611_v35 = vpop.f32.mrf.mxu0  ;;  %v1867_v36 = vpop.f32.mrf.mxu1 }
 0x1bb   : > { %v2688_v37 = vmax.f32 %v2560_v31, 0.0  ;;  %v2752_v38 = vmax.f32 %v2624_v32, 0.0  ;;  %v2426_v39 = vmul.f32 %v5140_v55, %v1611_v35  ;;  %v2490_v40 = vmul.f32 %v5140_v55, %v1867_v36 }
 0x1bc   : > { %v1613_v41 = vpop.f32.mrf.mxu0  ;;  %v1869_v42 = vpop.f32.mrf.mxu1 }
 0x1bd   : > { %v4067_v43 = vpack.c.bf16 %v2688_v37, %v2687_v33  ;;  %v4227_v44 = vpack.c.bf16 %v2752_v38, %v2751_v34  ;;  %v2561_v45 = vadd.f32 %v5146_v59, %v2426_v39  ;;  %v2625_v46 = vadd.f32 %v5146_v59, %v2490_v40 }
 0x1be   : > { %v1614_v47 = vpop.f32.mrf.mxu0  ;;  %v1870_v48 = vpop.f32.mrf.mxu1 }
 0x1bf   : > { %4327 = vst [vmem:[%s5166_s9 + $0x70] sm:$0xff] %v4067_v43   ;;  %4359 = vst [vmem:[%s5166_s9 + $0x170] sm:$0xff] %v4227_v44   ;;  %v2427_v49 = vmul.f32 %v5140_v55, %v1614_v47  ;;  %v2491_v50 = vmul.f32 %v5140_v55, %v1870_v48  ;;  %v2689_v56 = vmax.f32 %v2561_v45, 0.0  ;;  %v2753_v57 = vmax.f32 %v2625_v46, 0.0 }
 0x1c0   : > { %v1616_v51 = vpop.f32.mrf.mxu0  ;;  %v1872_v52 = vpop.f32.mrf.mxu1 }
 0x1c1   : > { %v2562_v53 = vadd.f32 %v5146_v59, %v2427_v49  ;;  %v2626_v54 = vadd.f32 %v5146_v59, %v2491_v50 }
 0x1c2   : > { %v1619_v58 = vpop.f32.mrf.mxu0  ;;  %v1875_v60 = vpop.f32.mrf.mxu1 }
 0x1c3   : > { %v2690_v61 = vmax.f32 %v2562_v53, 0.0  ;;  %v2754_v62 = vmax.f32 %v2626_v54, 0.0  ;;  %v2428_v63 = vmul.f32 %v5140_v55, %v1619_v58  ;;  %v2492_v0 = vmul.f32 %v5140_v55, %v1875_v60 }
 0x1c4   : > { %v1621_v1 = vpop.f32.mrf.mxu0  ;;  %v1877_v2 = vpop.f32.mrf.mxu1 }
 0x1c5   : > { %v4072_v3 = vpack.c.bf16 %v2690_v61, %v2689_v56  ;;  %v4232_v4 = vpack.c.bf16 %v2754_v62, %v2753_v57  ;;  %v2563_v5 = vadd.f32 %v5146_v59, %v2428_v63  ;;  %v2627_v6 = vadd.f32 %v5146_v59, %v2492_v0 }
 0x1c6   : > { %v1622_v7 = vpop.f32.mrf.mxu0  ;;  %v1878_v8 = vpop.f32.mrf.mxu1 }
 0x1c7   : > { %4328 = vst [vmem:[%s5166_s9 + $0x78] sm:$0xff] %v4072_v3   ;;  %4360 = vst [vmem:[%s5166_s9 + $0x178] sm:$0xff] %v4232_v4   ;;  %v2429_v9 = vmul.f32 %v5140_v55, %v1622_v7  ;;  %v2493_v10 = vmul.f32 %v5140_v55, %v1878_v8  ;;  %v2691_v15 = vmax.f32 %v2563_v5, 0.0  ;;  %v2755_v16 = vmax.f32 %v2627_v6, 0.0  ;;  %v5367_v3 = vld [vmem:[%s5563_s2] ss:$0 sm:$0xff] }
 0x1c8   : > { %v1624_v11 = vpop.f32.mrf.mxu0  ;;  %v1880_v12 = vpop.f32.mrf.mxu1  ;;  %v5374_v8 = vld [vmem:[%s5564_s3] ss:$0 sm:$0xff] }
 0x1c9   : > { %v2564_v13 = vadd.f32 %v5146_v59, %v2429_v9  ;;  %v2628_v14 = vadd.f32 %v5146_v59, %v2493_v10 }
 0x1ca   : > { %v1627_v17 = vpop.f32.mrf.mxu0  ;;  %v1883_v18 = vpop.f32.mrf.mxu1 }
 0x1cb   : > { %v2692_v19 = vmax.f32 %v2564_v13, 0.0  ;;  %v2756_v20 = vmax.f32 %v2628_v14, 0.0  ;;  %v2430_v21 = vmul.f32 %v5140_v55, %v1627_v17  ;;  %v2494_v22 = vmul.f32 %v5140_v55, %v1883_v18 }
 0x1cc   : > { %v1629_v23 = vpop.f32.mrf.mxu0  ;;  %v1885_v24 = vpop.f32.mrf.mxu1 }
 0x1cd   : > { %v4077_v25 = vpack.c.bf16 %v2692_v19, %v2691_v15  ;;  %v4237_v26 = vpack.c.bf16 %v2756_v20, %v2755_v16  ;;  %v2565_v27 = vadd.f32 %v5146_v59, %v2430_v21  ;;  %v2629_v28 = vadd.f32 %v5146_v59, %v2494_v22 }
 0x1ce   : > { %v1630_v29 = vpop.f32.mrf.mxu0  ;;  %v1886_v30 = vpop.f32.mrf.mxu1 }
 0x1cf   : > { %4329 = vst [vmem:[%s5166_s9 + $0x80] sm:$0xff] %v4077_v25   ;;  %4361 = vst [vmem:[%s5166_s9 + $0x180] sm:$0xff] %v4237_v26   ;;  %v2431_v31 = vmul.f32 %v5140_v55, %v1630_v29  ;;  %v2495_v32 = vmul.f32 %v5140_v55, %v1886_v30  ;;  %v2693_v37 = vmax.f32 %v2565_v27, 0.0  ;;  %v2757_v38 = vmax.f32 %v2629_v28, 0.0 }
 0x1d0   : > { %v1632_v33 = vpop.f32.mrf.mxu0  ;;  %v1888_v34 = vpop.f32.mrf.mxu1 }
 0x1d1   : > { %v2566_v35 = vadd.f32 %v5146_v59, %v2431_v31  ;;  %v2630_v36 = vadd.f32 %v5146_v59, %v2495_v32 }
 0x1d2   : > { %v1635_v39 = vpop.f32.mrf.mxu0  ;;  %v1891_v40 = vpop.f32.mrf.mxu1 }
 0x1d3   : > { %v2694_v41 = vmax.f32 %v2566_v35, 0.0  ;;  %v2758_v42 = vmax.f32 %v2630_v36, 0.0  ;;  %v2432_v43 = vmul.f32 %v5140_v55, %v1635_v39  ;;  %v2496_v44 = vmul.f32 %v5140_v55, %v1891_v40 }
 0x1d4   : > { %v1637_v45 = vpop.f32.mrf.mxu0  ;;  %v1893_v46 = vpop.f32.mrf.mxu1 }
 0x1d5   : > { %v4082_v47 = vpack.c.bf16 %v2694_v41, %v2693_v37  ;;  %v4242_v48 = vpack.c.bf16 %v2758_v42, %v2757_v38  ;;  %v2567_v49 = vadd.f32 %v5146_v59, %v2432_v43  ;;  %v2631_v50 = vadd.f32 %v5146_v59, %v2496_v44 }
 0x1d6   : > { %v1638_v51 = vpop.f32.mrf.mxu0  ;;  %v1894_v52 = vpop.f32.mrf.mxu1 }
 0x1d7   : > { %4330 = vst [vmem:[%s5166_s9 + $0x88] sm:$0xff] %v4082_v47   ;;  %4362 = vst [vmem:[%s5166_s9 + $0x188] sm:$0xff] %v4242_v48   ;;  %v2433_v53 = vmul.f32 %v5140_v55, %v1638_v51  ;;  %v2497_v54 = vmul.f32 %v5140_v55, %v1894_v52  ;;  %v2695_v61 = vmax.f32 %v2567_v49, 0.0  ;;  %v2759_v62 = vmax.f32 %v2631_v50, 0.0 }
 0x1d8   : > { %v1640_v56 = vpop.f32.mrf.mxu0  ;;  %v1896_v57 = vpop.f32.mrf.mxu1 }
 0x1d9   : > { %v2568_v58 = vadd.f32 %v5146_v59, %v2433_v53  ;;  %v2632_v60 = vadd.f32 %v5146_v59, %v2497_v54 }
 0x1da   : > { %v1643_v63 = vpop.f32.mrf.mxu0  ;;  %v1899_v0 = vpop.f32.mrf.mxu1 }
 0x1db   : > { %v2696_v1 = vmax.f32 %v2568_v58, 0.0  ;;  %v2760_v2 = vmax.f32 %v2632_v60, 0.0  ;;  %v2434_v55 = vmul.f32 %v5367_v3, %v1643_v63  ;;  %v2498_v4 = vmul.f32 %v5367_v3, %v1899_v0 }
 0x1dc   : > { %v1645_v5 = vpop.f32.mrf.mxu0  ;;  %v1901_v6 = vpop.f32.mrf.mxu1 }
 0x1dd   : > { %v4087_v59 = vpack.c.bf16 %v2696_v1, %v2695_v61  ;;  %v4247_v7 = vpack.c.bf16 %v2760_v2, %v2759_v62  ;;  %v2569_v9 = vadd.f32 %v5374_v8, %v2434_v55  ;;  %v2633_v10 = vadd.f32 %v5374_v8, %v2498_v4 }
 0x1de   : > { %v1646_v11 = vpop.f32.mrf.mxu0  ;;  %v1902_v12 = vpop.f32.mrf.mxu1 }
 0x1df   : > { %4331 = vst [vmem:[%s5166_s9 + $0x90] sm:$0xff] %v4087_v59   ;;  %4363 = vst [vmem:[%s5166_s9 + $0x190] sm:$0xff] %v4247_v7   ;;  %v2435_v13 = vmul.f32 %v5367_v3, %v1646_v11  ;;  %v2499_v14 = vmul.f32 %v5367_v3, %v1902_v12  ;;  %v2697_v19 = vmax.f32 %v2569_v9, 0.0  ;;  %v2761_v20 = vmax.f32 %v2633_v10, 0.0 }
 0x1e0   : > { %v1648_v15 = vpop.f32.mrf.mxu0  ;;  %v1904_v16 = vpop.f32.mrf.mxu1 }
 0x1e1   : > { %v2570_v17 = vadd.f32 %v5374_v8, %v2435_v13  ;;  %v2634_v18 = vadd.f32 %v5374_v8, %v2499_v14 }
 0x1e2   : > { %v1651_v21 = vpop.f32.mrf.mxu0  ;;  %v1907_v22 = vpop.f32.mrf.mxu1 }
 0x1e3   : > { %v2698_v23 = vmax.f32 %v2570_v17, 0.0  ;;  %v2762_v24 = vmax.f32 %v2634_v18, 0.0  ;;  %v2436_v25 = vmul.f32 %v5367_v3, %v1651_v21  ;;  %v2500_v26 = vmul.f32 %v5367_v3, %v1907_v22 }
 0x1e4   : > { %v1653_v27 = vpop.f32.mrf.mxu0  ;;  %v1909_v28 = vpop.f32.mrf.mxu1 }
 0x1e5   : > { %v4092_v29 = vpack.c.bf16 %v2698_v23, %v2697_v19  ;;  %v4252_v30 = vpack.c.bf16 %v2762_v24, %v2761_v20  ;;  %v2571_v31 = vadd.f32 %v5374_v8, %v2436_v25  ;;  %v2635_v32 = vadd.f32 %v5374_v8, %v2500_v26 }
 0x1e6   : > { %v1654_v33 = vpop.f32.mrf.mxu0  ;;  %v1910_v34 = vpop.f32.mrf.mxu1 }
 0x1e7   : > { %4332 = vst [vmem:[%s5166_s9 + $0x98] sm:$0xff] %v4092_v29   ;;  %4364 = vst [vmem:[%s5166_s9 + $0x198] sm:$0xff] %v4252_v30   ;;  %v2437_v35 = vmul.f32 %v5367_v3, %v1654_v33  ;;  %v2501_v36 = vmul.f32 %v5367_v3, %v1910_v34  ;;  %v2699_v41 = vmax.f32 %v2571_v31, 0.0  ;;  %v2763_v42 = vmax.f32 %v2635_v32, 0.0 }
 0x1e8   : > { %v1656_v37 = vpop.f32.mrf.mxu0  ;;  %v1912_v38 = vpop.f32.mrf.mxu1 }
 0x1e9   : > { %v2572_v39 = vadd.f32 %v5374_v8, %v2437_v35  ;;  %v2636_v40 = vadd.f32 %v5374_v8, %v2501_v36 }
 0x1ea   : > { %v1659_v43 = vpop.f32.mrf.mxu0  ;;  %v1915_v44 = vpop.f32.mrf.mxu1 }
 0x1eb   : > { %v2700_v45 = vmax.f32 %v2572_v39, 0.0  ;;  %v2764_v46 = vmax.f32 %v2636_v40, 0.0  ;;  %v2438_v47 = vmul.f32 %v5367_v3, %v1659_v43  ;;  %v2502_v48 = vmul.f32 %v5367_v3, %v1915_v44 }
 0x1ec   : > { %v1661_v49 = vpop.f32.mrf.mxu0  ;;  %v1917_v50 = vpop.f32.mrf.mxu1 }
 0x1ed   : > { %v4097_v51 = vpack.c.bf16 %v2700_v45, %v2699_v41  ;;  %v4257_v52 = vpack.c.bf16 %v2764_v46, %v2763_v42  ;;  %v2573_v53 = vadd.f32 %v5374_v8, %v2438_v47  ;;  %v2637_v54 = vadd.f32 %v5374_v8, %v2502_v48 }
 0x1ee   : > { %v1662_v56 = vpop.f32.mrf.mxu0  ;;  %v1918_v57 = vpop.f32.mrf.mxu1 }
 0x1ef   : > { %4333 = vst [vmem:[%s5166_s9 + $0xa0] sm:$0xff] %v4097_v51   ;;  %4365 = vst [vmem:[%s5166_s9 + $0x1a0] sm:$0xff] %v4257_v52   ;;  %v2439_v58 = vmul.f32 %v5367_v3, %v1662_v56  ;;  %v2503_v60 = vmul.f32 %v5367_v3, %v1918_v57  ;;  %v2701_v1 = vmax.f32 %v2573_v53, 0.0  ;;  %v2765_v2 = vmax.f32 %v2637_v54, 0.0 }
 0x1f0   : > { %v1664_v61 = vpop.f32.mrf.mxu0  ;;  %v1920_v62 = vpop.f32.mrf.mxu1 }
 0x1f1   : > { %v2574_v63 = vadd.f32 %v5374_v8, %v2439_v58  ;;  %v2638_v0 = vadd.f32 %v5374_v8, %v2503_v60 }
 0x1f2   : > { %v1667_v55 = vpop.f32.mrf.mxu0  ;;  %v1923_v4 = vpop.f32.mrf.mxu1 }
 0x1f3   : > { %v2702_v5 = vmax.f32 %v2574_v63, 0.0  ;;  %v2766_v6 = vmax.f32 %v2638_v0, 0.0  ;;  %v2440_v59 = vmul.f32 %v5367_v3, %v1667_v55  ;;  %v2504_v7 = vmul.f32 %v5367_v3, %v1923_v4 }
 0x1f4   : > { %v1669_v9 = vpop.f32.mrf.mxu0  ;;  %v1925_v10 = vpop.f32.mrf.mxu1 }
 0x1f5   : > { %v4102_v11 = vpack.c.bf16 %v2702_v5, %v2701_v1  ;;  %v4262_v12 = vpack.c.bf16 %v2766_v6, %v2765_v2  ;;  %v2575_v13 = vadd.f32 %v5374_v8, %v2440_v59  ;;  %v2639_v14 = vadd.f32 %v5374_v8, %v2504_v7 }
 0x1f6   : > { %v1670_v15 = vpop.f32.mrf.mxu0  ;;  %v1926_v16 = vpop.f32.mrf.mxu1 }
 0x1f7   : > { %4334 = vst [vmem:[%s5166_s9 + $0xa8] sm:$0xff] %v4102_v11   ;;  %4366 = vst [vmem:[%s5166_s9 + $0x1a8] sm:$0xff] %v4262_v12   ;;  %v2441_v17 = vmul.f32 %v5367_v3, %v1670_v15  ;;  %v2505_v18 = vmul.f32 %v5367_v3, %v1926_v16  ;;  %v2703_v23 = vmax.f32 %v2575_v13, 0.0  ;;  %v2767_v24 = vmax.f32 %v2639_v14, 0.0 }
 0x1f8   : > { %v1672_v19 = vpop.f32.mrf.mxu0  ;;  %v1928_v20 = vpop.f32.mrf.mxu1 }
 0x1f9   : > { %v2576_v21 = vadd.f32 %v5374_v8, %v2441_v17  ;;  %v2640_v22 = vadd.f32 %v5374_v8, %v2505_v18 }
 0x1fa   : > { %v1675_v25 = vpop.f32.mrf.mxu0  ;;  %v1931_v26 = vpop.f32.mrf.mxu1 }
 0x1fb   : > { %v2704_v27 = vmax.f32 %v2576_v21, 0.0  ;;  %v2768_v28 = vmax.f32 %v2640_v22, 0.0  ;;  %v2442_v29 = vmul.f32 %v5367_v3, %v1675_v25  ;;  %v2506_v30 = vmul.f32 %v5367_v3, %v1931_v26 }
 0x1fc   : > { %v1677_v31 = vpop.f32.mrf.mxu0  ;;  %v1933_v32 = vpop.f32.mrf.mxu1 }
 0x1fd   : > { %v4107_v33 = vpack.c.bf16 %v2704_v27, %v2703_v23  ;;  %v4267_v34 = vpack.c.bf16 %v2768_v28, %v2767_v24  ;;  %v2577_v35 = vadd.f32 %v5374_v8, %v2442_v29  ;;  %v2641_v36 = vadd.f32 %v5374_v8, %v2506_v30 }
 0x1fe   : > { %v1678_v37 = vpop.f32.mrf.mxu0  ;;  %v1934_v38 = vpop.f32.mrf.mxu1 }
 0x1ff   : > { %4335 = vst [vmem:[%s5166_s9 + $0xb0] sm:$0xff] %v4107_v33   ;;  %4367 = vst [vmem:[%s5166_s9 + $0x1b0] sm:$0xff] %v4267_v34   ;;  %v2443_v39 = vmul.f32 %v5367_v3, %v1678_v37  ;;  %v2507_v40 = vmul.f32 %v5367_v3, %v1934_v38  ;;  %v2705_v45 = vmax.f32 %v2577_v35, 0.0  ;;  %v2769_v46 = vmax.f32 %v2641_v36, 0.0 }
 0x200   : > { %v1680_v41 = vpop.f32.mrf.mxu0  ;;  %v1936_v42 = vpop.f32.mrf.mxu1 }
 0x201   : > { %v2578_v43 = vadd.f32 %v5374_v8, %v2443_v39  ;;  %v2642_v44 = vadd.f32 %v5374_v8, %v2507_v40 }
 0x202   : > { %v1683_v47 = vpop.f32.mrf.mxu0  ;;  %v1939_v48 = vpop.f32.mrf.mxu1 }
 0x203   : > { %v2706_v49 = vmax.f32 %v2578_v43, 0.0  ;;  %v2770_v50 = vmax.f32 %v2642_v44, 0.0  ;;  %v2444_v51 = vmul.f32 %v5367_v3, %v1683_v47  ;;  %v2508_v52 = vmul.f32 %v5367_v3, %v1939_v48 }
 0x204   : > { %v1685_v53 = vpop.f32.mrf.mxu0  ;;  %v1941_v54 = vpop.f32.mrf.mxu1 }
 0x205   : > { %v4112_v56 = vpack.c.bf16 %v2706_v49, %v2705_v45  ;;  %v4272_v57 = vpack.c.bf16 %v2770_v50, %v2769_v46  ;;  %v2579_v58 = vadd.f32 %v5374_v8, %v2444_v51  ;;  %v2643_v60 = vadd.f32 %v5374_v8, %v2508_v52 }
 0x206   : > { %v1686_v61 = vpop.f32.mrf.mxu0  ;;  %v1942_v62 = vpop.f32.mrf.mxu1 }
 0x207   : > { %4336 = vst [vmem:[%s5166_s9 + $0xb8] sm:$0xff] %v4112_v56   ;;  %4368 = vst [vmem:[%s5166_s9 + $0x1b8] sm:$0xff] %v4272_v57   ;;  %v2445_v63 = vmul.f32 %v5367_v3, %v1686_v61  ;;  %v2509_v0 = vmul.f32 %v5367_v3, %v1942_v62  ;;  %v2707_v5 = vmax.f32 %v2579_v58, 0.0  ;;  %v2771_v6 = vmax.f32 %v2643_v60, 0.0 }
 0x208   : > { %v1688_v1 = vpop.f32.mrf.mxu0  ;;  %v1944_v2 = vpop.f32.mrf.mxu1 }
 0x209   : > { %v2580_v55 = vadd.f32 %v5374_v8, %v2445_v63  ;;  %v2644_v4 = vadd.f32 %v5374_v8, %v2509_v0 }
 0x20a   : > { %v1691_v59 = vpop.f32.mrf.mxu0  ;;  %v1947_v7 = vpop.f32.mrf.mxu1 }
 0x20b   : > { %v2708_v9 = vmax.f32 %v2580_v55, 0.0  ;;  %v2772_v10 = vmax.f32 %v2644_v4, 0.0  ;;  %v2446_v11 = vmul.f32 %v5367_v3, %v1691_v59  ;;  %v2510_v12 = vmul.f32 %v5367_v3, %v1947_v7 }
 0x20c   : > { %v1693_v13 = vpop.f32.mrf.mxu0  ;;  %v1949_v14 = vpop.f32.mrf.mxu1 }
 0x20d   : > { %v4117_v15 = vpack.c.bf16 %v2708_v9, %v2707_v5  ;;  %v4277_v16 = vpack.c.bf16 %v2772_v10, %v2771_v6  ;;  %v2581_v17 = vadd.f32 %v5374_v8, %v2446_v11  ;;  %v2645_v18 = vadd.f32 %v5374_v8, %v2510_v12 }
 0x20e   : > { %v1694_v19 = vpop.f32.mrf.mxu0  ;;  %v1950_v20 = vpop.f32.mrf.mxu1 }
 0x20f   : > { %4337 = vst [vmem:[%s5166_s9 + $0xc0] sm:$0xff] %v4117_v15   ;;  %4369 = vst [vmem:[%s5166_s9 + $0x1c0] sm:$0xff] %v4277_v16   ;;  %v2447_v21 = vmul.f32 %v5367_v3, %v1694_v19  ;;  %v2511_v22 = vmul.f32 %v5367_v3, %v1950_v20  ;;  %v2709_v27 = vmax.f32 %v2581_v17, 0.0  ;;  %v2773_v28 = vmax.f32 %v2645_v18, 0.0 }
 0x210   : > { %v1696_v23 = vpop.f32.mrf.mxu0  ;;  %v1952_v24 = vpop.f32.mrf.mxu1 }
 0x211   : > { %v2582_v25 = vadd.f32 %v5374_v8, %v2447_v21  ;;  %v2646_v26 = vadd.f32 %v5374_v8, %v2511_v22 }
 0x212   : > { %v1699_v29 = vpop.f32.mrf.mxu0  ;;  %v1955_v30 = vpop.f32.mrf.mxu1 }
 0x213   : > { %v2710_v31 = vmax.f32 %v2582_v25, 0.0  ;;  %v2774_v32 = vmax.f32 %v2646_v26, 0.0  ;;  %v2448_v33 = vmul.f32 %v5367_v3, %v1699_v29  ;;  %v2512_v34 = vmul.f32 %v5367_v3, %v1955_v30 }
 0x214   : > { %v1701_v35 = vpop.f32.mrf.mxu0  ;;  %v1957_v36 = vpop.f32.mrf.mxu1 }
 0x215   : > { %v4122_v37 = vpack.c.bf16 %v2710_v31, %v2709_v27  ;;  %v4282_v38 = vpack.c.bf16 %v2774_v32, %v2773_v28  ;;  %v2583_v39 = vadd.f32 %v5374_v8, %v2448_v33  ;;  %v2647_v40 = vadd.f32 %v5374_v8, %v2512_v34 }
 0x216   : > { %v1702_v41 = vpop.f32.mrf.mxu0  ;;  %v1958_v42 = vpop.f32.mrf.mxu1 }
 0x217   : > { %4338 = vst [vmem:[%s5166_s9 + $0xc8] sm:$0xff] %v4122_v37   ;;  %4370 = vst [vmem:[%s5166_s9 + $0x1c8] sm:$0xff] %v4282_v38   ;;  %v2449_v43 = vmul.f32 %v5367_v3, %v1702_v41  ;;  %v2513_v44 = vmul.f32 %v5367_v3, %v1958_v42  ;;  %v2711_v49 = vmax.f32 %v2583_v39, 0.0  ;;  %v2775_v50 = vmax.f32 %v2647_v40, 0.0 }
 0x218   : > { %v1704_v45 = vpop.f32.mrf.mxu0  ;;  %v1960_v46 = vpop.f32.mrf.mxu1 }
 0x219   : > { %v2584_v47 = vadd.f32 %v5374_v8, %v2449_v43  ;;  %v2648_v48 = vadd.f32 %v5374_v8, %v2513_v44 }
 0x21a   : > { %v1707_v51 = vpop.f32.mrf.mxu0  ;;  %v1963_v52 = vpop.f32.mrf.mxu1 }
 0x21b   : > { %v2712_v53 = vmax.f32 %v2584_v47, 0.0  ;;  %v2776_v54 = vmax.f32 %v2648_v48, 0.0  ;;  %v2450_v56 = vmul.f32 %v5367_v3, %v1707_v51  ;;  %v2514_v57 = vmul.f32 %v5367_v3, %v1963_v52 }
 0x21c   : > { %v1709_v58 = vpop.f32.mrf.mxu0  ;;  %v1965_v60 = vpop.f32.mrf.mxu1 }
 0x21d   : > { %v4127_v61 = vpack.c.bf16 %v2712_v53, %v2711_v49  ;;  %v4287_v62 = vpack.c.bf16 %v2776_v54, %v2775_v50  ;;  %v2585_v63 = vadd.f32 %v5374_v8, %v2450_v56  ;;  %v2649_v0 = vadd.f32 %v5374_v8, %v2514_v57 }
 0x21e   : > { %v1710_v1 = vpop.f32.mrf.mxu0  ;;  %v1966_v2 = vpop.f32.mrf.mxu1 }
 0x21f   : > { %4339 = vst [vmem:[%s5166_s9 + $0xd0] sm:$0xff] %v4127_v61   ;;  %4371 = vst [vmem:[%s5166_s9 + $0x1d0] sm:$0xff] %v4287_v62   ;;  %v2451_v55 = vmul.f32 %v5367_v3, %v1710_v1  ;;  %v2515_v4 = vmul.f32 %v5367_v3, %v1966_v2  ;;  %v2713_v9 = vmax.f32 %v2585_v63, 0.0  ;;  %v2777_v10 = vmax.f32 %v2649_v0, 0.0 }
 0x220   : > { %v1712_v5 = vpop.f32.mrf.mxu0  ;;  %v1968_v6 = vpop.f32.mrf.mxu1 }
 0x221   : > { %v2586_v59 = vadd.f32 %v5374_v8, %v2451_v55  ;;  %v2650_v7 = vadd.f32 %v5374_v8, %v2515_v4 }
 0x222   : > { %v1715_v11 = vpop.f32.mrf.mxu0  ;;  %v1971_v12 = vpop.f32.mrf.mxu1 }
 0x223   : > { %v2714_v13 = vmax.f32 %v2586_v59, 0.0  ;;  %v2778_v14 = vmax.f32 %v2650_v7, 0.0  ;;  %v2452_v15 = vmul.f32 %v5367_v3, %v1715_v11  ;;  %v2516_v16 = vmul.f32 %v5367_v3, %v1971_v12 }
 0x224   : > { %v1717_v17 = vpop.f32.mrf.mxu0  ;;  %v1973_v18 = vpop.f32.mrf.mxu1 }
 0x225   : > { %v4132_v19 = vpack.c.bf16 %v2714_v13, %v2713_v9  ;;  %v4292_v20 = vpack.c.bf16 %v2778_v14, %v2777_v10  ;;  %v2587_v21 = vadd.f32 %v5374_v8, %v2452_v15  ;;  %v2651_v22 = vadd.f32 %v5374_v8, %v2516_v16 }
 0x226   : > { %v1718_v23 = vpop.f32.mrf.mxu0  ;;  %v1974_v24 = vpop.f32.mrf.mxu1 }
 0x227   : > { %4340 = vst [vmem:[%s5166_s9 + $0xd8] sm:$0xff] %v4132_v19   ;;  %4372 = vst [vmem:[%s5166_s9 + $0x1d8] sm:$0xff] %v4292_v20   ;;  %v2453_v25 = vmul.f32 %v5367_v3, %v1718_v23  ;;  %v2517_v26 = vmul.f32 %v5367_v3, %v1974_v24  ;;  %v2715_v31 = vmax.f32 %v2587_v21, 0.0  ;;  %v2779_v32 = vmax.f32 %v2651_v22, 0.0 }
 0x228   : > { %v1720_v27 = vpop.f32.mrf.mxu0  ;;  %v1976_v28 = vpop.f32.mrf.mxu1 }
 0x229   : > { %v2588_v29 = vadd.f32 %v5374_v8, %v2453_v25  ;;  %v2652_v30 = vadd.f32 %v5374_v8, %v2517_v26 }
 0x22a   : > { %v1723_v33 = vpop.f32.mrf.mxu0  ;;  %v1979_v34 = vpop.f32.mrf.mxu1 }
 0x22b   : > { %v2716_v35 = vmax.f32 %v2588_v29, 0.0  ;;  %v2780_v36 = vmax.f32 %v2652_v30, 0.0  ;;  %v2454_v37 = vmul.f32 %v5367_v3, %v1723_v33  ;;  %v2518_v38 = vmul.f32 %v5367_v3, %v1979_v34 }
 0x22c   : > { %v1725_v39 = vpop.f32.mrf.mxu0  ;;  %v1981_v40 = vpop.f32.mrf.mxu1 }
 0x22d   : > { %v4137_v41 = vpack.c.bf16 %v2716_v35, %v2715_v31  ;;  %v4297_v42 = vpack.c.bf16 %v2780_v36, %v2779_v32  ;;  %v2589_v43 = vadd.f32 %v5374_v8, %v2454_v37  ;;  %v2653_v44 = vadd.f32 %v5374_v8, %v2518_v38 }
 0x22e   : > { %v1726_v45 = vpop.f32.mrf.mxu0  ;;  %v1982_v46 = vpop.f32.mrf.mxu1 }
 0x22f   : > { %4341 = vst [vmem:[%s5166_s9 + $0xe0] sm:$0xff] %v4137_v41   ;;  %4373 = vst [vmem:[%s5166_s9 + $0x1e0] sm:$0xff] %v4297_v42   ;;  %v2455_v47 = vmul.f32 %v5367_v3, %v1726_v45  ;;  %v2519_v48 = vmul.f32 %v5367_v3, %v1982_v46  ;;  %v2717_v53 = vmax.f32 %v2589_v43, 0.0  ;;  %v2781_v54 = vmax.f32 %v2653_v44, 0.0 }
 0x230   : > { %v1728_v49 = vpop.f32.mrf.mxu0  ;;  %v1984_v50 = vpop.f32.mrf.mxu1 }
 0x231   : > { %v2590_v51 = vadd.f32 %v5374_v8, %v2455_v47  ;;  %v2654_v52 = vadd.f32 %v5374_v8, %v2519_v48 }
 0x232   : > { %v1731_v56 = vpop.f32.mrf.mxu0  ;;  %v1987_v57 = vpop.f32.mrf.mxu1 }
 0x233   : > { %v2718_v58 = vmax.f32 %v2590_v51, 0.0  ;;  %v2782_v60 = vmax.f32 %v2654_v52, 0.0  ;;  %v2456_v61 = vmul.f32 %v5367_v3, %v1731_v56  ;;  %v2520_v62 = vmul.f32 %v5367_v3, %v1987_v57 }
 0x234   : > { %v1733_v63 = vpop.f32.mrf.mxu0  ;;  %v1989_v0 = vpop.f32.mrf.mxu1 }
 0x235   : > { %v4142_v1 = vpack.c.bf16 %v2718_v58, %v2717_v53  ;;  %v4302_v2 = vpack.c.bf16 %v2782_v60, %v2781_v54  ;;  %v2591_v55 = vadd.f32 %v5374_v8, %v2456_v61  ;;  %v2655_v4 = vadd.f32 %v5374_v8, %v2520_v62 }
 0x236   : > { %v1734_v5 = vpop.f32.mrf.mxu0  ;;  %v1990_v6 = vpop.f32.mrf.mxu1 }
 0x237   : > { %4342 = vst [vmem:[%s5166_s9 + $0xe8] sm:$0xff] %v4142_v1   ;;  %4374 = vst [vmem:[%s5166_s9 + $0x1e8] sm:$0xff] %v4302_v2   ;;  %v2457_v59 = vmul.f32 %v5367_v3, %v1734_v5  ;;  %v2521_v7 = vmul.f32 %v5367_v3, %v1990_v6  ;;  %v2719_v13 = vmax.f32 %v2591_v55, 0.0  ;;  %v2783_v14 = vmax.f32 %v2655_v4, 0.0 }
 0x238   : > { %v1736_v9 = vpop.f32.mrf.mxu0  ;;  %v1992_v10 = vpop.f32.mrf.mxu1 }
 0x239   : > { %v2592_v11 = vadd.f32 %v5374_v8, %v2457_v59  ;;  %v2656_v12 = vadd.f32 %v5374_v8, %v2521_v7 }
 0x23a   : > { %v1739_v15 = vpop.f32.mrf.mxu0  ;;  %v1995_v16 = vpop.f32.mrf.mxu1 }
 0x23b   : > { %v2720_v17 = vmax.f32 %v2592_v11, 0.0  ;;  %v2784_v18 = vmax.f32 %v2656_v12, 0.0  ;;  %v2458_v19 = vmul.f32 %v5367_v3, %v1739_v15  ;;  %v2522_v20 = vmul.f32 %v5367_v3, %v1995_v16 }
 0x23c   : > { %v1741_v21 = vpop.f32.mrf.mxu0  ;;  %v1997_v22 = vpop.f32.mrf.mxu1 }
 0x23d   : > { %v4147_v23 = vpack.c.bf16 %v2720_v17, %v2719_v13  ;;  %v4307_v24 = vpack.c.bf16 %v2784_v18, %v2783_v14  ;;  %v2593_v27 = vadd.f32 %v5374_v8, %v2458_v19  ;;  %v2657_v28 = vadd.f32 %v5374_v8, %v2522_v20 }
 0x23e   : > { %v1742_v25 = vpop.f32.mrf.mxu0  ;;  %v1998_v26 = vpop.f32.mrf.mxu1 }
 0x23f   : > { %4343 = vst [vmem:[%s5166_s9 + $0xf0] sm:$0xff] %v4147_v23   ;;  %4375 = vst [vmem:[%s5166_s9 + $0x1f0] sm:$0xff] %v4307_v24   ;;  %v2459_v29 = vmul.f32 %v5367_v3, %v1742_v25  ;;  %v2523_v30 = vmul.f32 %v5367_v3, %v1998_v26  ;;  %v2721_v35 = vmax.f32 %v2593_v27, 0.0  ;;  %v2785_v36 = vmax.f32 %v2657_v28, 0.0 }
 0x240   : > { %v1744_v31 = vpop.f32.mrf.mxu0  ;;  %v2000_v32 = vpop.f32.mrf.mxu1 }
 0x241   : > { %v2594_v33 = vadd.f32 %v5374_v8, %v2459_v29  ;;  %v2658_v34 = vadd.f32 %v5374_v8, %v2523_v30 }
 0x243   : > { %v2722_v37 = vmax.f32 %v2594_v33, 0.0  ;;  %v2786_v38 = vmax.f32 %v2658_v34, 0.0 }
 0x245   : > { %v4152_v3 = vpack.c.bf16 %v2722_v37, %v2721_v35  ;;  %v4312_v39 = vpack.c.bf16 %v2786_v38, %v2785_v36 }
 0x247   : > { %4344 = vst [vmem:[%s5166_s9 + $0xf8] sm:$0xff] %v4152_v3   ;;  %4376 = vst [vmem:[%s5166_s9 + $0x1f8] sm:$0xff] %v4312_v39  }
 0x248   : > { %4766 = shalt.err (!%p4763_p5)
}
 0x249   : > { %s4767_s7 = scalar_lea.hbm %s5509_s1, 8192  ;;  %s4771_s24 = scalar_lea.hbm %s5565_s4, 16384 }
 0x24a   : > { %p4768_p7 = scmp.ne.s32.totalorder %s5509_s1, %s4767_s7  ;;  %p4772_p9 = scmp.lt.s32.totalorder %s5509_s1, %s5565_s4 }
 0x24b   : > { %p4773_p11 = scmp.lt.s32.totalorder %s4771_s24, %s4767_s7 }
 0x24c   : > { %p4769_p6 = pnand %p4768_p7, %p4961_p13 }
 0x24d   : > { %p4774_p12 = por %p4773_p11, %p4772_p9 }
 0x24e   : > { %p4770_p4 = pneg %p4769_p6 }
 0x250   : > { %p4775_p1 = pnand %p4774_p12, %p4770_p4 }
 0x252   : > { %4778 = shalt.err (!%p4775_p1)
}
 0x253   : > { %s4847_s11 = smov 64   ;;  %s4848_s29 = smov 4  }
 0x254   : > { %4415 = dma.vmem_to_hbm [thread:$0]  (%p4961_p13), %s5511_s12, 8192, %s5509_s1, %s3428_s18, %s4847_s11, %s4847_s11, %s4848_s29  }
 0x255 PF: > { %s3457_s22 = sand.u32 1, %s4817_s15   ;;  %p5579_p8 = scmp.ne.s32.totalorder %s5571_s26, 0 }
 0x256   : > { %p5580_p10 = scmp.ge.s32.totalorder %s4837_s20, 2  ;;  %s3458_s30 = scalar_lea.sflag [#allocation5], %s3457_s22 }
 0x258   : > { %p4426_p0 = pnand %p5580_p10, %p5579_p8 }
 0x25a   : > { %p4427_p2 = pneg %p4426_p0 }
 0x25c   : > { %4812 = dma.done.wait (%p4427_p2), %s3458_s30, 8192  }
 0x25d   : > { %4814 = vsyncadd (%p4427_p2), %s3458_s30, 4294959104  ;;  %s21_s20 = sadd.s32 1, %s4837_s20   ;;  %s5581_s15 = smov %s4821_s16 }
 0x25e   : > { %p18_p3 = scmp.ge.s32.totalorder %s21_s20, 4   ;;  %s5582_s16 = smov %s4825_s17 }
 0x25f   : > { %s5583_s17 = smov %s4970_s28  ;;  %s5584_s18 = smov %s4833_s19 }
 0x260   : > { %s5585_s19 = smov %s5587_s5  ;;  %20 = sbr.rel (!%p18_p3) target bundleno = 9 (0x9), region = 100 }
 0x265   :  { %3463 = vsyncpa [#allocation4], 1 }
 0x266   :  { %3465 = vsyncpa [#allocation4 + $0x1], 1 }
 0x267   :  { %3466 = vsyncpa [#allocation7], 1 }
 0x268   :  { %3467 = vsyncpa [#allocation5], 1 }
 0x269   :  { %3469 = vsyncpa [#allocation5 + $0x1], 1 }

</bundles_post_ra>
